<compile_context>
chip_gen: v7x
topology: tpu7x:2x2x1
jax: 0.10.0
libtpu: 0.0.40
codegen_flags: <defaults>
</compile_context>

<pallas_src>
import jax
import jax.numpy as jnp
from jax.experimental import pallas as pl
from jax.experimental.pallas import tpu as pltpu


# ---------------------------------------------------------------------------
# Kernel
# ---------------------------------------------------------------------------
def _ext_attn_kernel(q_ref, mkT_ref, mvT_ref, out_ref):
    bt, n, d = q_ref.shape          # (B_TILE, N, d_model), bf16
    s = mkT_ref.shape[1]            # S

    # --- mk projection: one lane/sublane-dense MXU matmul over the tile -----
    # (bt, N, D) -> (bt*N, D) is a pure relabel (N=16 matches the bf16
    # sublane pack; last dim unchanged).
    q2 = q_ref[...].reshape(bt * n, d)
    logits = jnp.dot(q2, mkT_ref[...],
                     preferred_element_type=jnp.float32)        # (bt*N, S) f32
    logits = logits.reshape(bt, n, s)                           # (bt, N, S)

    # --- softmax over dim=1 (the N axis), all math in f32 -------------------
    logits = logits - jnp.max(logits, axis=1, keepdims=True)
    e = jnp.exp(logits)
    inv_n = pl.reciprocal(jnp.sum(e, axis=1, keepdims=True), approx=True)
    p = e * inv_n                                               # softmax(dim=1)

    # --- re-normalize over dim=2 (the S axis) --------------------------------
    # TODO(synk): like the PyTorch reference, no epsilon here; an all-zero row
    # of p (extreme logits) would produce Inf/NaN.
    inv_s = pl.reciprocal(jnp.sum(p, axis=2, keepdims=True), approx=True)
    attn = (p * inv_s).astype(jnp.bfloat16)

    # --- mv projection: one MXU matmul, f32 accumulation ---------------------
    out = jnp.dot(attn.reshape(bt * n, s), mvT_ref[...],
                  preferred_element_type=jnp.float32)           # (bt*N, D)
    out_ref[...] = out.reshape(bt, n, d).astype(out_ref.dtype)


# ---------------------------------------------------------------------------
# Tile selection (VMEM-budgeted, >= 2 grid steps when possible)
# ---------------------------------------------------------------------------
def _choose_batch_tile(B, N, D, S, out_bytes, *,
                       target_rows=1024, vmem_budget=32 * 1024 * 1024):
    """Pick bt so bt*N ~ target_rows, fits a conservative VMEM budget,
    and leaves >= 2 grid steps (both v7x TensorCores) when B allows."""
    def step_vmem(bt):
        q_in = 2 * bt * N * D * 2             # double-buffered bf16 query tile
        o_out = 2 * bt * N * D * out_bytes    # double-buffered output tile
        inter = 4 * bt * N * S * 4            # f32 logits/exp/p intermediates
        weights = 2 * D * S * 2               # resident bf16 weights
        return q_in + o_out + inter + weights

    bt = max(1, min(B, max(1, target_rows // max(N, 1))))
    if bt >= B and B > 1:                     # keep the grid at >= 2 steps
        bt = pl.cdiv(B, 2)
    while bt > 1 and step_vmem(bt) > vmem_budget:
        bt = pl.cdiv(bt, 2)
    return bt


# ---------------------------------------------------------------------------
# Wrapper (jit-friendly: all tiling decisions use static shapes)
# ---------------------------------------------------------------------------
def external_attention_forward(queries, mk_weight, mv_weight, *,
                               out_dtype=jnp.float32):
    """queries: (B, N, d_model).  mk_weight: (S, d_model).  mv_weight: (d_model, S)."""
    B, N, D = queries.shape
    S = mk_weight.shape[0]
    assert mk_weight.shape == (S, D) and mv_weight.shape == (D, S)

    out_bytes = jnp.dtype(out_dtype).itemsize
    bt = _choose_batch_tile(B, N, D, S, out_bytes)

    # Pad the batch dim so bt always divides it (no pathological bt=1 grids
    # for prime/odd B); padded rows never mix with real ones (softmax is per
    # batch index) and are sliced off below.
    B_pad = bt * pl.cdiv(B, bt)
    q = queries.astype(jnp.bfloat16)          # bf16 input halves HBM reads
    if B_pad != B:
        q = jnp.pad(q, ((0, B_pad - B), (0, 0), (0, 0)))

    # Weight transpose + bf16 cast: constant-folded / fused under jax.jit.
    mkT = mk_weight.T.astype(jnp.bfloat16)    # (D, S)
    mvT = mv_weight.T.astype(jnp.bfloat16)    # (S, D)

    out = pl.pallas_call(
        _ext_attn_kernel,
        out_shape=jax.ShapeDtypeStruct((B_pad, N, D), out_dtype),
        grid=(B_pad // bt,),
        in_specs=[
            pl.BlockSpec((bt, N, D), lambda i: (i, 0, 0)),      # query tile (streamed)
            pl.BlockSpec((D, S), lambda i: (0, 0)),             # mk^T (resident)
            pl.BlockSpec((S, D), lambda i: (0, 0)),             # mv^T (resident)
        ],
        out_specs=pl.BlockSpec((bt, N, D), lambda i: (i, 0, 0)),
        compiler_params=pltpu.CompilerParams(
            dimension_semantics=("parallel",),                  # both TCs on v7x
            vmem_limit_bytes=64 * 1024 * 1024,
        ),
    )(q, mkT, mvT)

    return out[:B] if B_pad != B else out


# ---------------------------------------------------------------------------
# Pure-JAX reference (matches the PyTorch forward exactly, in f32)
# ---------------------------------------------------------------------------
def external_attention_ref(queries, mk_weight, mv_weight):
    attn = jnp.einsum("bnd,sd->bns", queries, mk_weight)
    attn = jax.nn.softmax(attn, axis=1)
    attn = attn / jnp.sum(attn, axis=2, keepdims=True)
    return jnp.einsum("bns,ds->bnd", attn, mv_weight)


if __name__ == "__main__":
    # d_model = 128, S = 64 as in the module; B*N = 1024 rows -> 2 grid steps
    # of 512 rows each (multiple of 256 for the v6e/v7x MXU).
    B, N, D, S = 64, 16, 128, 64
    key = jax.random.PRNGKey(0)
    kq, kmk, kmv = jax.random.split(key, 3)

    queries = jax.random.normal(kq, (B, N, D), jnp.float32)
    # PyTorch nn.Linear default init: U(-1/sqrt(fan_in), 1/sqrt(fan_in)), bias=False.
    mk_weight = jax.random.uniform(kmk, (S, D), jnp.float32, -1.0 / D ** 0.5, 1.0 / D ** 0.5)
    mv_weight = jax.random.uniform(kmv, (D, S), jnp.float32, -1.0 / S ** 0.5, 1.0 / S ** 0.5)

    fwd = jax.jit(external_attention_forward)
    out = fwd(queries, mk_weight, mv_weight)
    out = jax.block_until_ready(out)

    assert out.shape == (B, N, D), out.shape
    assert bool(jnp.all(jnp.isfinite(out)))

    # Loose tolerance: bf16 matmul operands + approx EUP reciprocals (f32 accumulation).
    ref = external_attention_ref(queries, mk_weight, mv_weight)
    max_err = float(jnp.max(jnp.abs(out - ref)))
    assert max_err < 5e-2, max_err

    print("KERNEL_OK")
</pallas_src>

<mosaic_0001>
module attributes {stable_mosaic.version = 11 : i64} {
  func.func @_ext_attn_kernel(%arg0: i32, %arg1: memref<32x16x128xbf16, #tpu.memory_space<vmem>>, %arg2: memref<128x64xbf16, #tpu.memory_space<vmem>>, %arg3: memref<64x128xbf16, #tpu.memory_space<vmem>>, %arg4: memref<32x16x128xf32, #tpu.memory_space<vmem>>) attributes {dimension_semantics = [#tpu.dimension_semantics<parallel>], iteration_bounds = array<i64: 2>, scalar_prefetch = 0 : i64, scratch_operands = 0 : i64, tpu.core_type = #tpu.core_type<tc>, window_params = [{transform_indices = @transform_0, window_bounds = array<i64: 32, 16, 128>}, {pipeline_mode = #tpu.pipeline_mode<synchronous>, transform_indices = @transform_1, window_bounds = array<i64: 128, 64>}, {pipeline_mode = #tpu.pipeline_mode<synchronous>, transform_indices = @transform_2, window_bounds = array<i64: 64, 128>}, {transform_indices = @transform_3, window_bounds = array<i64: 32, 16, 128>}]} {
    %c0 = arith.constant 0 : index
    %c0_0 = arith.constant 0 : index
    %c0_1 = arith.constant 0 : index
    %0 = vector.load %arg1[%c0, %c0_0, %c0_1] : memref<32x16x128xbf16, #tpu.memory_space<vmem>>, vector<32x16x128xbf16>
    %1 = vector.shape_cast %0 : vector<32x16x128xbf16> to vector<512x128xbf16>
    %c0_2 = arith.constant 0 : index
    %c0_3 = arith.constant 0 : index
    %2 = vector.load %arg2[%c0_2, %c0_3] : memref<128x64xbf16, #tpu.memory_space<vmem>>, vector<128x64xbf16>
    %cst = arith.constant dense<0.000000e+00> : vector<512x64xf32>
    %3 = tpu.matmul %1, %2, %cst {dimension_numbers = #tpu.dot_dimension_numbers<[1], [0], [0], [1], [0, 0, 1, 1], [], []>} : vector<512x128xbf16>, vector<128x64xbf16>, vector<512x64xf32> -> vector<512x64xf32>
    %4 = vector.shape_cast %3 : vector<512x64xf32> to vector<32x16x64xf32>
    %cst_4 = arith.constant dense<0xFF800000> : vector<32x64xf32>
    %5 = vector.multi_reduction <maximumf>, %4, %cst_4 [1] : vector<32x16x64xf32> to vector<32x64xf32>
    %6 = vector.shape_cast %5 : vector<32x64xf32> to vector<32x1x64xf32>
    %7 = vector.broadcast %6 : vector<32x1x64xf32> to vector<32x16x64xf32>
    %8 = arith.subf %4, %7 : vector<32x16x64xf32>
    %9 = math.exp %8 : vector<32x16x64xf32>
    %cst_5 = arith.constant dense<0.000000e+00> : vector<32x64xf32>
    %10 = vector.multi_reduction <add>, %9, %cst_5 [1] : vector<32x16x64xf32> to vector<32x64xf32>
    %11 = vector.shape_cast %10 : vector<32x64xf32> to vector<32x1x64xf32>
    %12 = tpu.reciprocal %11 {approx = true} : vector<32x1x64xf32> -> vector<32x1x64xf32>
    %13 = vector.broadcast %12 : vector<32x1x64xf32> to vector<32x16x64xf32>
    %14 = arith.mulf %9, %13 : vector<32x16x64xf32>
    %cst_6 = arith.constant dense<0.000000e+00> : vector<32x16xf32>
    %15 = vector.multi_reduction <add>, %14, %cst_6 [2] : vector<32x16x64xf32> to vector<32x16xf32>
    %16 = vector.shape_cast %15 : vector<32x16xf32> to vector<32x16x1xf32>
    %17 = tpu.reciprocal %16 {approx = true} : vector<32x16x1xf32> -> vector<32x16x1xf32>
    %18 = vector.broadcast %17 : vector<32x16x1xf32> to vector<32x16x64xf32>
    %19 = arith.mulf %14, %18 : vector<32x16x64xf32>
    %20 = arith.truncf %19 : vector<32x16x64xf32> to vector<32x16x64xbf16>
    %21 = vector.shape_cast %20 : vector<32x16x64xbf16> to vector<512x64xbf16>
    %c0_7 = arith.constant 0 : index
    %c0_8 = arith.constant 0 : index
    %22 = vector.load %arg3[%c0_7, %c0_8] : memref<64x128xbf16, #tpu.memory_space<vmem>>, vector<64x128xbf16>
    %cst_9 = arith.constant dense<0.000000e+00> : vector<512x128xf32>
    %23 = tpu.matmul %21, %22, %cst_9 {dimension_numbers = #tpu.dot_dimension_numbers<[1], [0], [0], [1], [0, 0, 1, 1], [], []>} : vector<512x64xbf16>, vector<64x128xbf16>, vector<512x128xf32> -> vector<512x128xf32>
    %24 = vector.shape_cast %23 : vector<512x128xf32> to vector<32x16x128xf32>
    %c0_10 = arith.constant 0 : index
    %c0_11 = arith.constant 0 : index
    %c0_12 = arith.constant 0 : index
    %25 = vector.load %arg4[%c0_10, %c0_11, %c0_12] : memref<32x16x128xf32, #tpu.memory_space<vmem>>, vector<32x16x128xf32>
    tpu.vector_store %arg4[%c0_10, %c0_11, %c0_12], %24 {strides = array<i32>} : memref<32x16x128xf32, #tpu.memory_space<vmem>>, vector<32x16x128xf32>,
    return
  }
  func.func @transform_0(%arg0: i32) -> (i32, i32, i32) {
    %c0_i32 = arith.constant 0 : i32
    %c0_i32_0 = arith.constant 0 : i32
    %c0_i32_1 = arith.constant 0 : i32
    return %arg0, %c0_i32, %c0_i32_0 : i32, i32, i32
  }
  func.func @transform_1(%arg0: i32) -> (i32, i32) {
    %c0_i32 = arith.constant 0 : i32
    %c0_i32_0 = arith.constant 0 : i32
    %c0_i32_1 = arith.constant 0 : i32
    return %c0_i32, %c0_i32_0 : i32, i32
  }
  func.func @transform_2(%arg0: i32) -> (i32, i32) {
    %c0_i32 = arith.constant 0 : i32
    %c0_i32_0 = arith.constant 0 : i32
    %c0_i32_1 = arith.constant 0 : i32
    return %c0_i32, %c0_i32_0 : i32, i32
  }
  func.func @transform_3(%arg0: i32) -> (i32, i32, i32) {
    %c0_i32 = arith.constant 0 : i32
    %c0_i32_0 = arith.constant 0 : i32
    %c0_i32_1 = arith.constant 0 : i32
    return %arg0, %c0_i32, %c0_i32_0 : i32, i32, i32
  }
}

</mosaic_0001>

<bundles_post_ra>
// kernel: external_attention_forward.1
= control target key start
LH: loop header
LB: loop body
LE: loop exit
PB: predicated region body
PF: predicated region fallthrough
CT: control target
= control target key end

     0   :  { %8 = vsyncpa [#allocation3], 0  ;;  %s5078_s0 = inlined_call_operand.hbm [shape: bf16[64,16,128], index: 0, kind: input, shape index: {}]   ;;  %s5079_s1 = inlined_call_operand.hbm [shape: bf16[128,64], index: 1, kind: input, shape index: {}]   ;;  %s5080_s2 = inlined_call_operand.hbm [shape: bf16[64,128], index: 2, kind: input, shape index: {}]   ;;  %s5081_s3 = inlined_call_operand.hbm [shape: f32[64,16,128], index: 3, kind: output, shape index: {}]  }
   0x1   :  { %10 = vsyncpa [#allocation3 + $0x1], 0 }
   0x2   :  { %11 = vsyncpa [#allocation6], 0 }
   0x3   :  { %12 = vsyncpa [#allocation4], 0 }
   0x4   :  { %14 = vsyncpa [#allocation4 + $0x1], 0  ;;  %s3585_s12 = smov 0   ;;  %s3587_s13 = smov 0  }
   0x5   :  { %s3589_s14 = smov 0   ;;  %s3591_s15 = smov 0  }
   0x6 LB: > { %s3606_s16 = sadd.s32 4294967295, %s3555_s15   ;;  %s2636_s17 = sadd.s32 4294967294, %s3555_s15   ;;  %s3555_s15 = sphi %s3591_s15, %s5249_s15   ;;  %s3551_s14 = sphi %s3589_s14, %s5248_s14   ;;  %s3547_s13 = sphi %s3587_s13, %s5247_s13   ;;  %s3543_s12 = sphi %s3585_s12, %s5246_s12  }
   0x7   : > { %p40_p0 = scmp.ne.s32.totalorder %s3547_s13, %s3543_s12  ;;  %p5082_p1 = scmp.eq.s32.totalorder %s3606_s16, 0 }
   0x8   : > { %p112_p3 = scmp.eq.s32.totalorder %s2636_s17, 1  ;;  %p2637_p5 = scmp.ge.s32.totalorder %s3555_s15, 1 }
   0x9   : > { %p3615_p4 = por %p5082_p1, %p40_p0  ;;  %p119_p7 = scmp.lt.s32.totalorder %s3555_s15, 3 }
   0xa   : > { %p3620_p6 = por %p112_p3, %p40_p0  ;;  %s3557_s21 = smov [#allocation5]  }
   0xb   : > { %s5133_s18 = scalar_select %p3615_p4, 1, 0 }
   0xc   : > { %s5134_s19 = scalar_select %p3620_p6, 1, 0 }
   0xd   : > { %p3625_p8 = pnand %p2637_p5, %p119_p7  ;;  %s131_s22 = sshll.u32 %s3557_s21, 4  ;;  %s3629_s22 = int_to_ptr.vmem [resolvable:$true] %s131_s22 }
   0xe   : > { %s3558_s24 = smov [#allocation7]   ;;  %s3399_s28 = scalar_lea.hbm %s5079_s1, 1024 }
   0xf   : > { %p2976_p9 = pneg %p3625_p8  ;;  %s144_s25 = sshll.u32 %s3558_s24, 4  ;;  %s3640_s25 = int_to_ptr.vmem [resolvable:$true] %s144_s25 }
  0x10   : > { %p3400_p12 = scmp.ne.s32.totalorder %s5079_s1, %s3399_s28  ;;  %p3406_p5 = scmp.lt.u32.totalorder %s3399_s28, %s5079_s1 }
  0x11   : > { %p3636_p11 = pnand %p2976_p9, %p5082_p1 }
  0x13   : > { %p3401_p13 = pneg %p3636_p11 }
  0x15   : > { %p3402_p0 = pnand %p3401_p13, %p3400_p12 }
  0x17   : > { %p3403_p3 = pneg %p3402_p0 }
  0x19   : > { %p3408_p7 = pnand %p3406_p5, %p3403_p3 }
  0x1b   : > { %3411 = shalt.err (!%p3408_p7)
}
  0x1c   : > { %s3412_s6 = scalar_lea.vmem %s3629_s22, 1024  ;;  %p3420_p2 = scmp.lt.s32.totalorder %s3629_s22, %s3629_s22 }
  0x1d   : > { %p3413_p9 = scmp.ne.s32.totalorder %s3629_s22, %s3412_s6  ;;  %p3421_p12 = scmp.lt.s32.totalorder %s3412_s6, %s3412_s6 }
  0x1f   : > { %p3415_p10 = pnand %p3413_p9, %p3401_p13  ;;  %p3422_p0 = por %p3421_p12, %p3420_p2 }
  0x21   : > { %p3416_p1 = pneg %p3415_p10 }
  0x23   : > { %p3423_p6 = pnand %p3422_p0, %p3416_p1 }
  0x25   : > { %3426 = shalt.err (!%p3423_p6)
}
  0x26   : > { %s3559_s7 = smov 64   ;;  %s3560_s8 = smov 4  }
  0x27   : > { %2979 = dma.hbm_to_vmem [thread:$0]  (!%p3636_p11), %s5079_s1, 1024, %s3629_s22, [#allocation6], %s3559_s7, %s3559_s7, %s3560_s8  }
  0x28   : > { %s3427_s21 = scalar_lea.hbm %s5080_s2, 512 }
  0x29   : > { %p3428_p1 = scmp.ne.s32.totalorder %s5080_s2, %s3427_s21  ;;  %p3434_p10 = scmp.lt.u32.totalorder %s3427_s21, %s5080_s2 }
  0x2b   : > { %p3430_p2 = pnand %p3428_p1, %p3401_p13 }
  0x2d   : > { %p3431_p6 = pneg %p3430_p2 }
  0x2f   : > { %p3436_p3 = pnand %p3434_p10, %p3431_p6 }
  0x31   : > { %3439 = shalt.err (!%p3436_p3)
}
  0x32   : > { %s3440_s22 = scalar_lea.vmem %s3640_s25, 512  ;;  %p3448_p12 = scmp.lt.s32.totalorder %s3640_s25, %s3640_s25 }
  0x33   : > { %p3441_p5 = scmp.ne.s32.totalorder %s3640_s25, %s3440_s22  ;;  %p3449_p0 = scmp.lt.s32.totalorder %s3440_s22, %s3440_s22 }
  0x35   : > { %p3443_p7 = pnand %p3441_p5, %p3401_p13  ;;  %p3450_p1 = por %p3449_p0, %p3448_p12 }
  0x37   : > { %p3444_p9 = pneg %p3443_p7 }
  0x39   : > { %p3451_p2 = pnand %p3450_p1, %p3444_p9 }
  0x3b   : > { %3454 = shalt.err (!%p3451_p2)
}
  0x3c   : > { %2982 = dma.hbm_to_vmem [thread:$0]  (!%p3636_p11), %s5080_s2, 512, %s3640_s25, [#allocation6], %s3559_s7, %s3559_s7, %s3560_s8  }
  0x3d   : > { %s3701_s23 = sadd.s32 1, %s3555_s15   ;;  %s27_s4 = sadd.s32 1, %s3551_s14 }
  0x3e   : > { %s24_s5 = ssub.s32 %s3555_s15, %s3701_s23  ;;  %p34_p13 = scmp.ne.s32.totalorder %s3551_s14, %s3547_s13 }
  0x3f   : > { %p25_p6 = scmp.eq.s32.totalorder %s24_s5, 0  ;;  %p35_p10 = scmp.eq.s32.totalorder %s3555_s15, 0 }
  0x40   : > { %p5137_p3 = scmp.eq.s32.totalorder %s3606_s16, 1  ;;  %p2993_p7 = scmp.lt.s32.totalorder %s3555_s15, 2 }
  0x41   : > { %s3717_s9 = scalar_select %p25_p6, %s3551_s14, %s27_s4  }
  0x42   : > { %p3711_p5 = por %p5137_p3, %p34_p13  ;;  %p36_p9 = por %p35_p10, %p34_p13 }
  0x43   : > { %s158_s10 = sand.u32 1, %s3551_s14   ;;  %s2733_s25 = sshll.u32 %s3555_s15, 12 }
  0x44   : > { %s5138_s6 = scalar_select %p3711_p5, 1, 0 }
  0x45   : > { %s2641_s11 = sshll.u32 %s158_s10, 8  ;;  %s3724_s24 = scalar_lea.hbm %s5078_s0, %s2733_s25 }
  0x46   : > { %s162_s26 = scalar_lea.vmem [#allocation2], %s2641_s11  ;;  %p3728_p11 = pnand %p2993_p7, %p36_p9 }
  0x47   : > { %s170_s27 = sshll.u32 %s162_s26, 4  ;;  %s3732_s22 = scalar_lea.sflag [#allocation3], %s158_s10  ;;  %s3726_s27 = int_to_ptr.vmem [resolvable:$true] %s170_s27 }
  0x48   : > { %s3455_s29 = scalar_lea.hbm %s3724_s24, 4096  ;;  %p3457_p0 = pneg %p3728_p11 }
  0x49   : > { %p3456_p12 = scmp.ne.s32.totalorder %s3724_s24, %s3455_s29  ;;  %s3460_s5 = scalar_lea.hbm %s5078_s0, 8192 }
  0x4a   : > { %p3461_p13 = scmp.lt.u32.totalorder %s3724_s24, %s5078_s0  ;;  %p3462_p6 = scmp.lt.u32.totalorder %s3460_s5, %s3455_s29 }
  0x4b   : > { %p3458_p1 = pnand %p3457_p0, %p3456_p12  ;;  %p3464_p3 = scmp.lt.u32.totalorder %s3455_s29, %s3724_s24 }
  0x4c   : > { %p3463_p10 = por %p3462_p6, %p3461_p13 }
  0x4d   : > { %p3459_p2 = pneg %p3458_p1 }
  0x4e   : > { %p3465_p7 = por %p3464_p3, %p3463_p10 }
  0x50   : > { %p3466_p9 = pnand %p3465_p7, %p3459_p2 }
  0x52   : > { %3469 = shalt.err (!%p3466_p9)
}
  0x53   : > { %s3470_s10 = scalar_lea.vmem %s3726_s27, 4096  ;;  %s3561_s17 = smov [#allocation2]  }
  0x54   : > { %p3471_p12 = scmp.ne.s32.totalorder %s3726_s27, %s3470_s10  ;;  %s3475_s21 = sshll.u32 %s3561_s17, 4  ;;  %s3476_s21 = int_to_ptr.vmem [resolvable:$false] %s3475_s21 }
  0x55   : > { %s3477_s26 = scalar_lea.vmem %s3476_s21, 8192  ;;  %p3478_p4 = scmp.lt.s32.totalorder %s3726_s27, %s3476_s21 }
  0x56   : > { %p3473_p1 = pnand %p3471_p12, %p3457_p0  ;;  %p3479_p13 = scmp.lt.s32.totalorder %s3477_s26, %s3470_s10 }
  0x58   : > { %p3474_p5 = pneg %p3473_p1  ;;  %p3480_p6 = por %p3479_p13, %p3478_p4 }
  0x5a   : > { %p3481_p10 = pnand %p3480_p6, %p3474_p5 }
  0x5c   : > { %3484 = shalt.err (!%p3481_p10)
}
  0x5d   : > { %2986 = dma.hbm_to_vmem [thread:$0]  (!%p3728_p11), %s3724_s24, 4096, %s3726_s27, %s3732_s22, %s3559_s7, %s3559_s7, %s3560_s8  }
  0x5e   : > { %182 = sbr.rel (%p3625_p8) target bundleno = 1022 (0x3fe), region = 32 }
  0x65   : > { %s3766_s29 = sand.u32 1, %s3547_s13   ;;  %p5140_p4 = scmp.ne.s32.totalorder %s5133_s18, 0 }
  0x66   : > { %s2646_s30 = sshll.u32 %s3766_s29, 8  ;;  %s185_s4 = scalar_lea.sflag [#allocation3], %s3766_s29 }
  0x67   : > { %s3770_s5 = scalar_lea.vmem [#allocation2], %s2646_s30 }
  0x68   : > { %3530 = dma.done.wait (%p5140_p4), %s185_s4, 4096  }
  0x69   : > { %3532 = vsyncadd (%p5140_p4), %s185_s4, 4294963200  ;;  %p5141_p5 = scmp.eq.s32.totalorder %s3606_s16, 0 }
  0x6b   : > { %3534 = dma.done.wait (%p5141_p5), [#allocation6], 1536   ;;  %p5142_p8 = pmov %p5141_p5 }
  0x6c   : > { %v3035_v0 = vld [vmem:[#allocation5] sm:$0xff]   ;;  %v3036_v1 = vld [vmem:[#allocation5 + $0x8] sm:$0xff]   ;;  %v3037_v2 = vld [vmem:[#allocation5 + $0x10] sm:$0xff]   ;;  %vm831_vm0 = vcmask 523264   ;;  %s2649_s18 = sshll.u32 %s3766_s29, 9  ;;  %s2735_s7 = sshll.u32 %s3606_s16, 13 }
  0x6d   : > { %3536 = vsyncadd (%p5142_p8), [#allocation6], 4294965760  ;;  %2812 = vmatprep.subr.bf16.mxu0 %v3035_v0  ;;  %v3038_v3 = vld [vmem:[#allocation5 + $0x18] sm:$0xff]   ;;  %v3043_v4 = vld [vmem:[%s3770_s5] sm:$0xff]   ;;  %s4961_s20 = scalar_lea.vmem [#allocation8], %s2649_s18  ;;  %s5029_s28 = scalar_lea.hbm %s5081_s3, %s2735_s7 }
  0x6e   : > { %2813 = vmatpush3.bf16.msra.mxu0 %v3035_v0  ;;  %2828 = vmatprep.mubr.bf16.mxu0 %v3043_v4  ;;  %v3039_v5 = vld [vmem:[#allocation5 + $0x20] sm:$0xff]   ;;  %v3040_v6 = vld [vmem:[#allocation5 + $0x28] sm:$0xff]   ;;  %v3041_v7 = vld [vmem:[#allocation5 + $0x30] sm:$0xff]   ;;  %s2544_s8 = sshll.u32 %s4961_s20, 4  ;;  %s2530_s16 = scalar_lea.sflag [#allocation4], %s3766_s29  ;;  %s5031_s8 = int_to_ptr.vmem [resolvable:$true] %s2544_s8 }
  0x6f   : > { %2814 = vmatprep.subr.bf16.mxu0 %v3036_v1  ;;  %v3042_v8 = vld [vmem:[#allocation5 + $0x38] sm:$0xff]   ;;  %v3044_v9 = vld [vmem:[%s3770_s5 + $0x8] sm:$0xff]   ;;  %v3045_v10 = vld [vmem:[%s3770_s5 + $0x10] sm:$0xff]   ;;  %s3485_s22 = scalar_lea.vmem %s5031_s8, 8192  ;;  %p5243_p0 = scmp.ne.s32.totalorder %s5138_s6, 0 }
  0x70   : > { %v3046_v11 = vld [vmem:[%s3770_s5 + $0x18] sm:$0xff]   ;;  %v3047_v12 = vld [vmem:[%s3770_s5 + $0x20] sm:$0xff]   ;;  %v3048_v13 = vld [vmem:[%s3770_s5 + $0x28] sm:$0xff]   ;;  %p3486_p11 = scmp.ne.s32.totalorder %s5031_s8, %s3485_s22  ;;  %s3562_s11 = smov [#allocation8]  }
  0x71   : > { %v3049_v14 = vld [vmem:[%s3770_s5 + $0x30] sm:$0xff]   ;;  %v3050_v15 = vld [vmem:[%s3770_s5 + $0x38] sm:$0xff]   ;;  %v3051_v16 = vld [vmem:[%s3770_s5 + $0x40] sm:$0xff]   ;;  %s3489_s25 = sshll.u32 %s3562_s11, 4  ;;  %s3490_s25 = int_to_ptr.vmem [resolvable:$false] %s3489_s25 }
  0x72   : > { %2815 = vmatpush3.bf16.msra.mxu0 %v3036_v1  ;;  %v3052_v17 = vld [vmem:[%s3770_s5 + $0x48] sm:$0xff]   ;;  %v3053_v18 = vld [vmem:[%s3770_s5 + $0x50] sm:$0xff]   ;;  %v3054_v19 = vld [vmem:[%s3770_s5 + $0x58] sm:$0xff]   ;;  %p3487_p2 = pnand %p3486_p11, %p5243_p0  ;;  %s3491_s10 = scalar_lea.vmem %s3490_s25, 16384 }
  0x73   : > { %2816 = vmatprep.subr.bf16.mxu0 %v3037_v2  ;;  %v3055_v20 = vld [vmem:[%s3770_s5 + $0x60] sm:$0xff]   ;;  %v3056_v21 = vld [vmem:[%s3770_s5 + $0x68] sm:$0xff]   ;;  %v3057_v22 = vld [vmem:[%s3770_s5 + $0x70] sm:$0xff]   ;;  %p3492_p7 = scmp.lt.s32.totalorder %s5031_s8, %s3490_s25  ;;  %p3493_p9 = scmp.lt.s32.totalorder %s3491_s10, %s3485_s22 }
  0x74   : > { %v3058_v23 = vld [vmem:[%s3770_s5 + $0x78] sm:$0xff]   ;;  %v3059_v24 = vld [vmem:[%s3770_s5 + $0x80] sm:$0xff]   ;;  %v3060_v25 = vld [vmem:[%s3770_s5 + $0x88] sm:$0xff]   ;;  %p3488_p3 = pneg %p3487_p2 }
  0x75   : > { %v3061_v26 = vld [vmem:[%s3770_s5 + $0x90] sm:$0xff]   ;;  %v3062_v27 = vld [vmem:[%s3770_s5 + $0x98] sm:$0xff]   ;;  %v3063_v28 = vld [vmem:[%s3770_s5 + $0xa0] sm:$0xff]   ;;  %p3494_p12 = por %p3493_p9, %p3492_p7 }
  0x76   : > { %2817 = vmatpush3.bf16.msra.mxu0 %v3037_v2  ;;  %v3064_v29 = vld [vmem:[%s3770_s5 + $0xa8] sm:$0xff]   ;;  %v3065_v30 = vld [vmem:[%s3770_s5 + $0xb0] sm:$0xff]   ;;  %v3066_v31 = vld [vmem:[%s3770_s5 + $0xb8] sm:$0xff]  }
  0x77   : > { %2818 = vmatprep.subr.bf16.mxu0 %v3038_v3  ;;  %v3067_v32 = vld [vmem:[%s3770_s5 + $0xc0] sm:$0xff]   ;;  %v3068_v33 = vld [vmem:[%s3770_s5 + $0xc8] sm:$0xff]   ;;  %v3069_v34 = vld [vmem:[%s3770_s5 + $0xd0] sm:$0xff]   ;;  %p3495_p1 = pnand %p3494_p12, %p3488_p3 }
  0x78   : > { %v3070_v35 = vld [vmem:[%s3770_s5 + $0xd8] sm:$0xff]   ;;  %v3071_v36 = vld [vmem:[%s3770_s5 + $0xe0] sm:$0xff]   ;;  %v3072_v37 = vld [vmem:[%s3770_s5 + $0xe8] sm:$0xff]  }
  0x79   : > { %v3073_v38 = vld [vmem:[%s3770_s5 + $0xf0] sm:$0xff]   ;;  %v3074_v39 = vld [vmem:[%s3770_s5 + $0xf8] sm:$0xff]  }
  0x7a   : > { %2819 = vmatpush3.bf16.msra.mxu0 %v3038_v3 }
  0x7b   : > { %2820 = vmatprep.subr.bf16.mxu0 %v3039_v5 }
  0x7e   : > { %2821 = vmatpush3.bf16.msra.mxu0 %v3039_v5 }
  0x7f   : > { %2822 = vmatprep.subr.bf16.mxu0 %v3040_v6 }
  0x82   : > { %2823 = vmatpush3.bf16.msra.mxu0 %v3040_v6 }
  0x83   : > { %2824 = vmatprep.subr.bf16.mxu0 %v3041_v7 }
  0x86   : > { %2825 = vmatpush3.bf16.msra.mxu0 %v3041_v7 }
  0x87   : > { %2826 = vmatprep.subr.bf16.mxu0 %v3042_v8 }
  0x8a   : > { %2827 = vmatpush3.bf16.msra.mxu0 %v3042_v8 }
  0x8d   : > { %2829 = vmatmul.mubr.bf16.vlgmr.msra.gmra.mrb[0].mxu0 %v3044_v9 }
  0x8e   : > { %2832 = vmatprep.mubr.bf16.mxu0 %v3045_v10 }
  0x95   : > { %2833 = vmatmul.mubr.bf16.gmra.mrb[4].mxu0 %v3046_v11 }
  0x96   : > { %2836 = vmatprep.mubr.bf16.mxu0 %v3047_v12 }
  0x9d   : > { %2837 = vmatmul.mubr.bf16.gmra.mrb[8].mxu0 %v3048_v13 }
  0x9e   : > { %2840 = vmatprep.mubr.bf16.mxu0 %v3049_v14 }
  0xa5   : > { %2841 = vmatmul.mubr.bf16.gmra.mrb[12].mxu0 %v3050_v15 }
  0xa6   : > { %2844 = vmatprep.mubr.bf16.mxu0 %v3051_v16 }
  0xad   : > { %2845 = vmatmul.mubr.bf16.gmra.mrb[16].mxu0 %v3052_v17 }
  0xae   : > { %2848 = vmatprep.mubr.bf16.mxu0 %v3053_v18 }
  0xb5   : > { %2849 = vmatmul.mubr.bf16.gmra.mrb[20].mxu0 %v3054_v19 }
  0xb6   : > { %2852 = vmatprep.mubr.bf16.mxu0 %v3055_v20 }
  0xbd   : > { %2853 = vmatmul.mubr.bf16.gmra.mrb[24].mxu0 %v3056_v21 }
  0xbe   : > { %2856 = vmatprep.mubr.bf16.mxu0 %v3057_v22 }
  0xc5   : > { %2857 = vmatmul.mubr.bf16.gmra.mrb[28].mxu0 %v3058_v23 }
  0xc6   : > { %2860 = vmatprep.mubr.bf16.mxu0 %v3059_v24 }
  0xcd   : > { %2861 = vmatmul.mubr.bf16.gmra.mrb[32].mxu0 %v3060_v25 }
  0xce   : > { %2864 = vmatprep.mubr.bf16.mxu0 %v3061_v26 }
  0xd5   : > { %2865 = vmatmul.mubr.bf16.gmra.mrb[36].mxu0 %v3062_v27 }
  0xd6   : > { %2868 = vmatprep.mubr.bf16.mxu0 %v3063_v28 }
  0xdd   : > { %2869 = vmatmul.mubr.bf16.gmra.mrb[40].mxu0 %v3064_v29 }
  0xde   : > { %2872 = vmatprep.mubr.bf16.mxu0 %v3065_v30 }
  0xe5   : > { %2873 = vmatmul.mubr.bf16.gmra.mrb[44].mxu0 %v3066_v31 }
  0xe6   : > { %2876 = vmatprep.mubr.bf16.mxu0 %v3067_v32 }
  0xed   : > { %2877 = vmatmul.mubr.bf16.gmra.mrb[48].mxu0 %v3068_v33 }
  0xee   : > { %2880 = vmatprep.mubr.bf16.mxu0 %v3069_v34 }
  0xf5   : > { %2881 = vmatmul.mubr.bf16.gmra.mrb[52].mxu0 %v3070_v35 }
  0xf6   : > { %2884 = vmatprep.mubr.bf16.mxu0 %v3071_v36 }
  0xfd   : > { %2885 = vmatmul.mubr.bf16.gmra.mrb[56].mxu0 %v3072_v37 }
  0xfe   : > { %2888 = vmatprep.mubr.bf16.mxu0 %v3073_v38 }
 0x105   : > { %2889 = vmatmul.mubr.bf16.gmra.mrb[60].mxu0 %v3074_v39 }
 0x160   : > { %v2830_v40 = vpop.f32.mrb[0].mxu0 }
 0x161   : > { %v576_v41 = vpop.f32.mrb[1].mxu0  ;;  %v841_v43 = vsel %vm831_vm0, %v2830_v40, -inf }
 0x162   : > { %v2831_v42 = vpop.f32.mrb[2].mxu0  ;;  %v832_v46 = vsel %vm831_vm0, %v576_v41, -inf }
 0x163   : > { %v842_v44 = vsel %vm831_vm0, %v2831_v42, -inf  ;;  %v579_v45 = vpop.f32.mrb[3].mxu0 }
 0x164   : > { %v843_v47 = vmax.f32 %v841_v43, %v842_v44  ;;  %v833_v48 = vsel %vm831_vm0, %v579_v45, -inf }
 0x165   : > { %v834_v49 = vmax.f32 %v832_v46, %v833_v48 }
 0x166   : > { %v844_v50 = vrot.slane %v843_v47, 4 }
 0x167   : > { %v835_v51 = vrot.slane %v834_v49, 4 }
 0x168   : > { %v845_v52 = vmax.f32 %v843_v47, %v844_v50  ;;  %v3816_v53 = vpop.f32.mrb[4].mxu0 }
 0x169   : > { %v836_v54 = vmax.f32 %v834_v49, %v835_v51  ;;  %v859_v55 = vsel %vm831_vm0, %v3816_v53, -inf  ;;  %v3820_v56 = vpop.f32.mrb[5].mxu0 }
 0x16a   : > { %v846_v57 = vrot.slane %v845_v52, 2  ;;  %v3822_v58 = vpop.f32.mrb[6].mxu0  ;;  %v850_v63 = vsel %vm831_vm0, %v3820_v56, -inf }
 0x16b   : > { %v837_v59 = vrot.slane %v836_v54, 2  ;;  %v860_v60 = vsel %vm831_vm0, %v3822_v58, -inf  ;;  %v3826_v61 = vpop.f32.mrb[7].mxu0 }
 0x16c   : > { %v847_v62 = vmax.f32 %v845_v52, %v846_v57  ;;  %v861_v0 = vmax.f32 %v859_v55, %v860_v60  ;;  %v851_v1 = vsel %vm831_vm0, %v3826_v61, -inf }
 0x16d   : > { %v838_v2 = vmax.f32 %v836_v54, %v837_v59  ;;  %v852_v3 = vmax.f32 %v850_v63, %v851_v1 }
 0x16e   : > { %v848_v4 = vrot.slane %v847_v62, 1  ;;  %v862_v5 = vrot.slane %v861_v0, 4 }
 0x16f   : > { %v839_v6 = vrot.slane %v838_v2, 1  ;;  %v853_v7 = vrot.slane %v852_v3, 4 }
 0x170   : > { %v849_v8 = vmax.f32 %v847_v62, %v848_v4  ;;  %v863_v9 = vmax.f32 %v861_v0, %v862_v5  ;;  %v3832_v10 = vpop.f32.mrb[8].mxu0 }
 0x171   : > { %v840_v11 = vmax.f32 %v838_v2, %v839_v6  ;;  %v854_v12 = vmax.f32 %v852_v3, %v853_v7  ;;  %v877_v13 = vsel %vm831_vm0, %v3832_v10, -inf  ;;  %v3836_v14 = vpop.f32.mrb[9].mxu0 }
 0x172   : > { %v1122_v15 = vsub.f32 %v2830_v40, %v849_v8  ;;  %v1123_v16 = vsub.f32 %v2831_v42, %v849_v8  ;;  %v864_v17 = vrot.slane %v863_v9, 2  ;;  %v868_v18 = vsel %vm831_vm0, %v3836_v14, -inf  ;;  %v3840_v19 = vpop.f32.mrb[10].mxu0 }
 0x173   : > { %v1120_v20 = vsub.f32 %v576_v41, %v840_v11  ;;  %v1121_v21 = vsub.f32 %v579_v45, %v840_v11  ;;  %v855_v22 = vrot.slane %v854_v12, 2  ;;  %v878_v23 = vsel %vm831_vm0, %v3840_v19, -inf  ;;  %v3844_v24 = vpop.f32.mrb[11].mxu0 }
 0x174   : > { %v1188_v25 = vmul.f32 1.442695, %v1122_v15  ;;  %v1190_v26 = vmul.f32 1.442695, %v1123_v16  ;;  %v865_v27 = vmax.f32 %v863_v9, %v864_v17  ;;  %v879_v28 = vmax.f32 %v877_v13, %v878_v23 }
 0x175   : > { %v1184_v29 = vmul.f32 1.442695, %v1120_v20  ;;  %v1186_v30 = vmul.f32 1.442695, %v1121_v21  ;;  %v856_v31 = vmax.f32 %v854_v12, %v855_v22  ;;  %v869_v32 = vsel %vm831_vm0, %v3844_v24, -inf }
 0x176   : > { %3079 = vpow2.f32 %v1188_v25  ;;  %v866_v33 = vrot.slane %v865_v27, 1  ;;  %v880_v34 = vrot.slane %v879_v28, 4  ;;  %v870_v35 = vmax.f32 %v868_v18, %v869_v32 }
 0x177   : > { %3081 = vpow2.f32 %v1190_v26  ;;  %v857_v36 = vrot.slane %v856_v31, 1 }
 0x178   : > { %3083 = vpow2.f32 %v1184_v29  ;;  %v867_v37 = vmax.f32 %v865_v27, %v866_v33  ;;  %v881_v38 = vmax.f32 %v879_v28, %v880_v34  ;;  %v871_v39 = vrot.slane %v870_v35, 4  ;;  %v3848_v40 = vpop.f32.mrb[12].mxu0 }
 0x179   : > { %3085 = vpow2.f32 %v1186_v30  ;;  %v858_v41 = vmax.f32 %v856_v31, %v857_v36  ;;  %v895_v42 = vsel %vm831_vm0, %v3848_v40, -inf  ;;  %v3852_v43 = vpop.f32.mrb[13].mxu0 }
 0x17a   : > { %v1126_v44 = vsub.f32 %v3816_v53, %v867_v37  ;;  %v1127_v45 = vsub.f32 %v3822_v58, %v867_v37  ;;  %v882_v46 = vrot.slane %v881_v38, 2  ;;  %v872_v47 = vmax.f32 %v870_v35, %v871_v39  ;;  %v3856_v48 = vpop.f32.mrb[14].mxu0 }
 0x17b   : > { %v1124_v49 = vsub.f32 %v3820_v56, %v858_v41  ;;  %v1125_v50 = vsub.f32 %v3826_v61, %v858_v41  ;;  %v886_v51 = vsel %vm831_vm0, %v3852_v43, -inf  ;;  %v896_v52 = vsel %vm831_vm0, %v3856_v48, -inf  ;;  %v3864_v54 = vpop.f32.mrb[15].mxu0 }
 0x17c   : > { %v1196_v55 = vmul.f32 1.442695, %v1126_v44  ;;  %v1198_v53 = vmul.f32 1.442695, %v1127_v45  ;;  %v883_v57 = vmax.f32 %v881_v38, %v882_v46  ;;  %v873_v58 = vrot.slane %v872_v47, 2 }
 0x17d   : > { %v1192_v59 = vmul.f32 1.442695, %v1124_v49  ;;  %v1194_v60 = vmul.f32 1.442695, %v1125_v50  ;;  %v897_v62 = vmax.f32 %v895_v42, %v896_v52  ;;  %v887_v56 = vsel %vm831_vm0, %v3864_v54, -inf }
 0x17e   : > { %3087 = vpow2.f32 %v1196_v55  ;;  %v884_v61 = vrot.slane %v883_v57, 1  ;;  %v874_v63 = vmax.f32 %v872_v47, %v873_v58  ;;  %v888_v0 = vmax.f32 %v886_v51, %v887_v56 }
 0x17f   : > { %3089 = vpow2.f32 %v1198_v53  ;;  %v898_v1 = vrot.slane %v897_v62, 4 }
 0x180   : > { %v3868_v2 = vpop.eup %3079  ;;  %3091 = vpow2.f32 %v1192_v59  ;;  %v885_v3 = vmax.f32 %v883_v57, %v884_v61  ;;  %v875_v4 = vrot.slane %v874_v63, 1  ;;  %v889_v5 = vrot.slane %v888_v0, 4  ;;  %v3870_v6 = vpop.f32.mrb[16].mxu0 }
 0x181   : > { %v3872_v7 = vpop.eup %3081  ;;  %v1321_v8 = vsel %vm831_vm0, %v3868_v2, 0.0  ;;  %3093 = vpow2.f32 %v1194_v60  ;;  %v899_v9 = vmax.f32 %v897_v62, %v898_v1  ;;  %v3876_v11 = vpop.f32.mrb[17].mxu0  ;;  %v913_v34 = vsel %vm831_vm0, %v3870_v6, -inf }
 0x182   : > { %v3878_v12 = vpop.eup %3083  ;;  %v1322_v13 = vsel %vm831_vm0, %v3872_v7, 0.0  ;;  %v1130_v15 = vsub.f32 %v3832_v10, %v885_v3  ;;  %v1131_v16 = vsub.f32 %v3840_v19, %v885_v3  ;;  %v876_v17 = vmax.f32 %v874_v63, %v875_v4  ;;  %v3884_v18 = vpop.f32.mrb[18].mxu0 }
 0x183   : > { %v3886_v20 = vpop.eup %3085  ;;  %v1323_v21 = vadd.f32 %v1322_v13, %v1321_v8  ;;  %v1312_v22 = vsel %vm831_vm0, %v3878_v12, 0.0  ;;  %v900_v23 = vrot.slane %v899_v9, 2  ;;  %v890_v25 = vmax.f32 %v888_v0, %v889_v5  ;;  %v3890_v26 = vpop.f32.mrb[19].mxu0 }
 0x184   : > { %v1313_v27 = vsel %vm831_vm0, %v3886_v20, 0.0  ;;  %v1204_v28 = vmul.f32 1.442695, %v1130_v15  ;;  %v1206_v10 = vmul.f32 1.442695, %v1131_v16  ;;  %v1128_v19 = vsub.f32 %v3836_v14, %v876_v17 }
 0x185   : > { %v1314_v29 = vadd.f32 %v1313_v27, %v1312_v22  ;;  %v1129_v30 = vsub.f32 %v3844_v24, %v876_v17  ;;  %v901_v31 = vmax.f32 %v899_v9, %v900_v23  ;;  %v891_v33 = vrot.slane %v890_v25, 2 }
 0x186   : > { %3095 = vpow2.f32 %v1204_v28  ;;  %v1200_v32 = vmul.f32 1.442695, %v1128_v19  ;;  %v1324_v35 = vrot.slane %v1323_v21, 4  ;;  %v904_v37 = vsel %vm831_vm0, %v3876_v11, -inf }
 0x187   : > { %3097 = vpow2.f32 %v1206_v10  ;;  %v1202_v36 = vmul.f32 1.442695, %v1129_v30  ;;  %v902_v14 = vrot.slane %v901_v31, 1  ;;  %v892_v39 = vmax.f32 %v890_v25, %v891_v33 }
 0x188   : > { %v3900_v38 = vpop.eup %3087  ;;  %3099 = vpow2.f32 %v1200_v32  ;;  %v914_v24 = vsel %vm831_vm0, %v3884_v18, -inf  ;;  %v3904_v41 = vpop.f32.mrb[20].mxu0  ;;  %v1315_v44 = vrot.slane %v1314_v29, 4  ;;  %v905_v55 = vsel %vm831_vm0, %v3890_v26, -inf }
 0x189   : > { %v3906_v42 = vpop.eup %3089  ;;  %v1339_v45 = vsel %vm831_vm0, %v3900_v38, 0.0  ;;  %3101 = vpow2.f32 %v1202_v36  ;;  %v915_v46 = vmax.f32 %v913_v34, %v914_v24  ;;  %v3910_v47 = vpop.f32.mrb[21].mxu0  ;;  %v903_v51 = vmax.f32 %v901_v31, %v902_v14 }
 0x18a   : > { %v3912_v49 = vpop.eup %3091  ;;  %v1340_v50 = vsel %vm831_vm0, %v3906_v42, 0.0  ;;  %v893_v52 = vrot.slane %v892_v39, 1  ;;  %v3918_v53 = vpop.f32.mrb[22].mxu0  ;;  %v906_v62 = vmax.f32 %v904_v37, %v905_v55  ;;  %v3932_v17 = vadd.f32 %v1324_v35, %v1323_v21 }
 0x18b   : > { %v3920_v57 = vpop.eup %3093  ;;  %v1341_v58 = vadd.f32 %v1340_v50, %v1339_v45  ;;  %v1330_v59 = vsel %vm831_vm0, %v3912_v49, 0.0  ;;  %v916_v60 = vrot.slane %v915_v46, 4  ;;  %v3924_v56 = vpop.f32.mrb[23].mxu0  ;;  %v1134_v63 = vsub.f32 %v3848_v40, %v903_v51 }
 0x18c   : > { %v1331_v61 = vsel %vm831_vm0, %v3920_v57, 0.0  ;;  %v1135_v0 = vsub.f32 %v3856_v48, %v903_v51  ;;  %v894_v1 = vmax.f32 %v892_v39, %v893_v52  ;;  %v907_v8 = vrot.slane %v906_v62, 4 }
 0x18d   : > { %v1342_v3 = vrot.slane %v1341_v58, 4  ;;  %v1332_v4 = vadd.f32 %v1331_v61, %v1330_v59  ;;  %v917_v5 = vmax.f32 %v915_v46, %v916_v60  ;;  %v1212_v9 = vmul.f32 1.442695, %v1134_v63 }
 0x18e   : > { %v1214_v13 = vmul.f32 1.442695, %v1135_v0  ;;  %v1132_v15 = vsub.f32 %v3852_v43, %v894_v1  ;;  %v1133_v16 = vsub.f32 %v3864_v54, %v894_v1  ;;  %v3934_v22 = vadd.f32 %v1315_v44, %v1314_v29 }
 0x18f   : > { %v918_v23 = vrot.slane %v917_v5, 2  ;;  %v908_v25 = vmax.f32 %v906_v62, %v907_v8  ;;  %v3938_v48 = vadd.f32 %v1342_v3, %v1341_v58  ;;  %3103 = vpow2.f32 %v1212_v9 }
 0x190   : > { %v3936_v40 = vpop.eup %3095  ;;  %v1208_v27 = vmul.f32 1.442695, %v1132_v15  ;;  %v1210_v28 = vmul.f32 1.442695, %v1133_v16  ;;  %v3940_v10 = vpop.f32.mrb[24].mxu0  ;;  %v1333_v43 = vrot.slane %v1332_v4, 4  ;;  %3105 = vpow2.f32 %v1214_v13 }
 0x191   : > { %v3942_v19 = vpop.eup %3097  ;;  %v1357_v54 = vsel %vm831_vm0, %v3936_v40, 0.0  ;;  %v919_v21 = vmax.f32 %v917_v5, %v918_v23  ;;  %v3946_v29 = vpop.f32.mrb[25].mxu0  ;;  %v909_v32 = vrot.slane %v908_v25, 2  ;;  %v931_v33 = vsel %vm831_vm0, %v3904_v41, -inf }
 0x192   : > { %v3948_v30 = vpop.eup %3099  ;;  %v1358_v31 = vsel %vm831_vm0, %v3942_v19, 0.0  ;;  %3107 = vpow2.f32 %v1208_v27  ;;  %v3954_v34 = vpop.f32.mrb[26].mxu0  ;;  %v932_v45 = vsel %vm831_vm0, %v3918_v53, -inf  ;;  %v923_v46 = vsel %vm831_vm0, %v3924_v56, -inf }
 0x193   : > { %v3956_v35 = vpop.eup %3101  ;;  %v3958_v36 = vadd.f32 %v1358_v31, %v1357_v54  ;;  %v1348_v37 = vsel %vm831_vm0, %v3948_v30, 0.0  ;;  %3109 = vpow2.f32 %v1210_v28  ;;  %v920_v14 = vrot.slane %v919_v21, 1  ;;  %v3962_v39 = vpop.f32.mrb[27].mxu0 }
 0x194   : > { %v1349_v24 = vsel %vm831_vm0, %v3956_v35, 0.0  ;;  %v910_v44 = vmax.f32 %v908_v25, %v909_v32  ;;  %v922_v52 = vsel %vm831_vm0, %v3910_v47, -inf  ;;  %v933_v55 = vmax.f32 %v931_v33, %v932_v45 }
 0x195   : > { %v1350_v50 = vadd.f32 %v1349_v24, %v1348_v37  ;;  %v921_v51 = vmax.f32 %v919_v21, %v920_v14  ;;  %v3972_v58 = vadd.f32 %v1333_v43, %v1332_v4  ;;  %v924_v60 = vmax.f32 %v922_v52, %v923_v46 }
 0x196   : > { %v911_v59 = vrot.slane %v910_v44, 1  ;;  %v949_v62 = vsel %vm831_vm0, %v3940_v10, -inf  ;;  %v1360_v61 = vrot.slane %v3958_v36, 4  ;;  %v940_v1 = vsel %vm831_vm0, %v3946_v29, -inf }
 0x197   : > { %v1138_v63 = vsub.f32 %v3870_v6, %v921_v51  ;;  %v1139_v0 = vsub.f32 %v3884_v18, %v921_v51  ;;  %v934_v5 = vrot.slane %v933_v55, 4  ;;  %v925_v8 = vrot.slane %v924_v60, 4 }
 0x198   : > { %v912_v3 = vmax.f32 %v910_v44, %v911_v59  ;;  %v950_v4 = vsel %vm831_vm0, %v3954_v34, -inf  ;;  %v3983_v9 = vpop.f32.mrb[28].mxu0  ;;  %v1351_v13 = vrot.slane %v1350_v50, 4  ;;  %v941_v33 = vsel %vm831_vm0, %v3962_v39, -inf }
 0x199   : > { %v1220_v15 = vmul.f32 1.442695, %v1138_v63  ;;  %v1222_v16 = vmul.f32 1.442695, %v1139_v0  ;;  %v951_v23 = vmax.f32 %v949_v62, %v950_v4  ;;  %v3985_v25 = vpop.f32.mrb[29].mxu0  ;;  %v3987_v6 = vpop.eup %3103  ;;  %v935_v28 = vmax.f32 %v933_v55, %v934_v5 }
 0x19a   : > { %v1136_v18 = vsub.f32 %v3876_v11, %v912_v3  ;;  %v1137_v27 = vsub.f32 %v3890_v26, %v912_v3  ;;  %v926_v43 = vmax.f32 %v924_v60, %v925_v8  ;;  %v3991_v54 = vpop.f32.mrb[30].mxu0  ;;  %v3993_v21 = vpop.eup %3105  ;;  %v1375_v31 = vsel %vm831_vm0, %v3987_v6, 0.0 }
 0x19b   : > { %3111 = vpow2.f32 %v1220_v15  ;;  %v952_v32 = vrot.slane %v951_v23, 4  ;;  %v3999_v37 = vpop.f32.mrb[31].mxu0  ;;  %v1376_v11 = vsel %vm831_vm0, %v3993_v21, 0.0  ;;  %v936_v51 = vrot.slane %v935_v28, 2 }
 0x19c   : > { %v4001_v14 = vpop.eup %3107  ;;  %3113 = vpow2.f32 %v1222_v16  ;;  %v1216_v26 = vmul.f32 1.442695, %v1136_v18  ;;  %v1218_v24 = vmul.f32 1.442695, %v1137_v27  ;;  %v1377_v45 = vadd.f32 %v1376_v11, %v1375_v31 }
 0x19d   : > { %v4005_v44 = vpop.eup %3109  ;;  %v1366_v46 = vsel %vm831_vm0, %v4001_v14, 0.0  ;;  %v927_v52 = vrot.slane %v926_v43, 2  ;;  %v953_v59 = vmax.f32 %v951_v23, %v952_v32  ;;  %v942_v60 = vmax.f32 %v940_v1, %v941_v33 }
 0x19e   : > { %v1367_v55 = vsel %vm831_vm0, %v4005_v44, 0.0  ;;  %3115 = vpow2.f32 %v1216_v26  ;;  %v1378_v62 = vrot.slane %v1377_v45, 4  ;;  %v937_v0 = vmax.f32 %v935_v28, %v936_v51 }
 0x19f   : > { %v4011_v63 = vadd.f32 %v1367_v55, %v1366_v46  ;;  %3117 = vpow2.f32 %v1218_v24  ;;  %v928_v3 = vmax.f32 %v926_v43, %v927_v52  ;;  %v954_v5 = vrot.slane %v953_v59, 2 }
 0x1a0   : > { %v943_v8 = vrot.slane %v942_v60, 4  ;;  %v967_v4 = vsel %vm831_vm0, %v3983_v9, -inf  ;;  %v4015_v15 = vpop.f32.mrb[32].mxu0  ;;  %v4018_v16 = vadd.f32 %v1360_v61, %v3958_v36  ;;  %v4020_v18 = vadd.f32 %v1351_v13, %v1350_v50 }
 0x1a1   : > { %v4022_v23 = vadd.f32 %v1378_v62, %v1377_v45  ;;  %v938_v1 = vrot.slane %v937_v0, 1  ;;  %v4024_v27 = vpop.f32.mrb[33].mxu0  ;;  %v929_v31 = vrot.slane %v928_v3, 1  ;;  %v955_v28 = vmax.f32 %v953_v59, %v954_v5 }
 0x1a2   : > { %v944_v43 = vmax.f32 %v942_v60, %v943_v8  ;;  %v968_v32 = vsel %vm831_vm0, %v3991_v54, -inf  ;;  %v4028_v33 = vpop.f32.mrb[34].mxu0  ;;  %v958_v36 = vsel %vm831_vm0, %v3985_v25, -inf  ;;  %v959_v50 = vsel %vm831_vm0, %v3999_v37, -inf }
 0x1a3   : > { %v939_v11 = vmax.f32 %v937_v0, %v938_v1  ;;  %v969_v61 = vmax.f32 %v967_v4, %v968_v32  ;;  %v4034_v13 = vpop.f32.mrb[35].mxu0  ;;  %v930_v26 = vmax.f32 %v928_v3, %v929_v31  ;;  %v956_v24 = vrot.slane %v955_v28, 1 }
 0x1a4   : > { %v945_v45 = vrot.slane %v944_v43, 2  ;;  %v960_v46 = vmax.f32 %v958_v36, %v959_v50  ;;  %v1369_v52 = vrot.slane %v4011_v63, 4 }
 0x1a5   : > { %v4036_v51 = vpop.eup %3111  ;;  %v1142_v55 = vsub.f32 %v3904_v41, %v939_v11  ;;  %v1143_v59 = vsub.f32 %v3918_v53, %v939_v11  ;;  %v970_v60 = vrot.slane %v969_v61, 4  ;;  %v1140_v5 = vsub.f32 %v3910_v47, %v930_v26 }
 0x1a6   : > { %5143 = vst [vmem:[#allocation12_spill] sm:$0xff] %v4036_v51  ;;  %v4041_v62 = vpop.eup %3113  ;;  %v1393_v0 = vsel %vm831_vm0, %v4036_v51, 0.0  ;;  %v1141_v3 = vsub.f32 %v3924_v56, %v930_v26  ;;  %v957_v8 = vmax.f32 %v955_v28, %v956_v24  ;;  %v946_v32 = vmax.f32 %v944_v43, %v945_v45 }
 0x1a7   : > { %5144 = vst [vmem:[#allocation13_spill] sm:$0xff] %v4041_v62  ;;  %v1394_v4 = vsel %vm831_vm0, %v4041_v62, 0.0  ;;  %v1228_v1 = vmul.f32 1.442695, %v1142_v55  ;;  %v1230_v31 = vmul.f32 1.442695, %v1143_v59 }
 0x1a8   : > { %v4049_v41 = vpop.eup %3115  ;;  %v4051_v53 = vadd.f32 %v1394_v4, %v1393_v0  ;;  %v1224_v11 = vmul.f32 1.442695, %v1140_v5  ;;  %v1226_v36 = vmul.f32 1.442695, %v1141_v3  ;;  %v1146_v50 = vsub.f32 %v3940_v10, %v957_v8  ;;  %v4054_v51 = vpop.f32.mrb[36].mxu0 }
 0x1a9   : > { %5145 = vst [vmem:[#allocation14_spill] sm:$0xff] %v4049_v41  ;;  %v4056_v47 = vpop.eup %3117  ;;  %v1384_v56 = vsel %vm831_vm0, %v4049_v41, 0.0  ;;  %3119 = vpow2.f32 %v1228_v1  ;;  %v1147_v28 = vsub.f32 %v3954_v34, %v957_v8  ;;  %v947_v26 = vrot.slane %v946_v32, 1  ;;  %v4061_v43 = vpop.f32.mrb[37].mxu0 }
 0x1aa   : > { %5146 = vst [vmem:[#allocation15_spill] sm:$0xff] %v4056_v47  ;;  %v1385_v24 = vsel %vm831_vm0, %v4056_v47, 0.0  ;;  %3121 = vpow2.f32 %v1230_v31  ;;  %v1236_v45 = vmul.f32 1.442695, %v1146_v50  ;;  %v1326_v10 = vrot.slane %v3932_v17, 2  ;;  %v4066_v55 = vpop.f32.mrb[38].mxu0 }
 0x1ab   : > { %v4068_v59 = vadd.f32 %v1385_v24, %v1384_v56  ;;  %3123 = vpow2.f32 %v1224_v11  ;;  %v1238_v0 = vmul.f32 1.442695, %v1147_v28  ;;  %v948_v5 = vmax.f32 %v946_v32, %v947_v26  ;;  %v4070_v3 = vpop.f32.mrb[39].mxu0 }
 0x1ac   : > { %v4073_v34 = vadd.f32 %v1369_v52, %v4011_v63  ;;  %3125 = vpow2.f32 %v1226_v36  ;;  %v971_v8 = vmax.f32 %v969_v61, %v970_v60  ;;  %v961_v4 = vrot.slane %v960_v46, 4 }
 0x1ad   : > { %3127 = vpow2.f32 %v1236_v45  ;;  %v1144_v31 = vsub.f32 %v3946_v29, %v948_v5  ;;  %v1145_v50 = vsub.f32 %v3962_v39, %v948_v5  ;;  %v1327_v32 = vadd.f32 %v1326_v10, %v3932_v17 }
 0x1ae   : > { %3129 = vpow2.f32 %v1238_v0  ;;  %v972_v56 = vrot.slane %v971_v8, 2  ;;  %v962_v11 = vmax.f32 %v960_v46, %v961_v4  ;;  %v1317_v52 = vrot.slane %v3934_v22, 2 }
 0x1af   : > { %v1232_v26 = vmul.f32 1.442695, %v1144_v31  ;;  %v1234_v63 = vmul.f32 1.442695, %v1145_v50  ;;  %v1328_v36 = vrot.slane %v1327_v32, 1  ;;  %v985_v24 = vsel %vm831_vm0, %v4015_v15, -inf }
 0x1b0   : > { %v973_v61 = vmax.f32 %v971_v8, %v972_v56  ;;  %v963_v60 = vrot.slane %v962_v11, 2  ;;  %v4083_v29 = vpop.f32.mrb[40].mxu0  ;;  %v1318_v39 = vadd.f32 %v1317_v52, %v3934_v22  ;;  %v976_v17 = vsel %vm831_vm0, %v4024_v27, -inf }
 0x1b1   : > { %3131 = vpow2.f32 %v1232_v26  ;;  %v986_v46 = vsel %vm831_vm0, %v4028_v33, -inf  ;;  %v4090_v45 = vpop.f32.mrb[41].mxu0  ;;  %v1329_v5 = vadd.f32 %v1328_v36, %v1327_v32  ;;  %v977_v22 = vsel %vm831_vm0, %v4034_v13, -inf }
 0x1b2   : > { %3133 = vpow2.f32 %v1234_v63  ;;  %v974_v10 = vrot.slane %v973_v61, 1  ;;  %v964_v0 = vmax.f32 %v962_v11, %v963_v60  ;;  %v4092_v8 = vpop.f32.mrb[42].mxu0  ;;  %v1319_v31 = vrot.slane %v1318_v39, 1 }
 0x1b3   : > { %v4094_v4 = vpop.eup %3119  ;;  %v987_v50 = vmax.f32 %v985_v24, %v986_v46  ;;  %v1335_v56 = vrot.slane %v3972_v58, 2  ;;  %v4099_v26 = vpop.f32.mrb[43].mxu0  ;;  %3135 = vrcp.f32 %v1329_v5  ;;  %v978_v28 = vmax.f32 %v976_v17, %v977_v22 }
 0x1b4   : > { %5147 = vst [vmem:[#allocation16_spill] sm:$0xff] %v4094_v4  ;;  %v4101_v52 = vpop.eup %3121  ;;  %v1411_v63 = vsel %vm831_vm0, %v4094_v4, 0.0  ;;  %v975_v11 = vmax.f32 %v973_v61, %v974_v10  ;;  %v965_v32 = vrot.slane %v964_v0, 1  ;;  %v1320_v24 = vadd.f32 %v1319_v31, %v1318_v39 }
 0x1b5   : > { %5148 = vst [vmem:[#allocation17_spill] sm:$0xff] %v4101_v52  ;;  %v4105_v60 = vpop.eup %3123  ;;  %v1412_v36 = vsel %vm831_vm0, %v4101_v52, 0.0  ;;  %v988_v46 = vrot.slane %v987_v50, 4 }
 0x1b6   : > { %5149 = vst [vmem:[#allocation18_spill] sm:$0xff] %v4105_v60  ;;  %v4109_v1 = vpop.eup %3125  ;;  %v1413_v62 = vadd.f32 %v1412_v36, %v1411_v63  ;;  %v1402_v41 = vsel %vm831_vm0, %v4105_v60, 0.0  ;;  %v1150_v47 = vsub.f32 %v3983_v9, %v975_v11  ;;  %v1151_v61 = vsub.f32 %v3991_v54, %v975_v11 }
 0x1b7   : > { %5150 = vst [vmem:[#allocation19_spill] sm:$0xff] %v4109_v1  ;;  %v4115_v10 = vpop.eup %3127  ;;  %v1403_v5 = vsel %vm831_vm0, %v4109_v1, 0.0  ;;  %v966_v4 = vmax.f32 %v964_v0, %v965_v32  ;;  %3137 = vrcp.f32 %v1320_v24  ;;  %v989_v39 = vmax.f32 %v987_v50, %v988_v46 }
 0x1b8   : > { %5151 = vst [vmem:[#allocation20_spill] sm:$0xff] %v4115_v10  ;;  %v4119_v31 = vpop.eup %3129  ;;  %v1414_v17 = vrot.slane %v1413_v62, 4  ;;  %v1404_v22 = vadd.f32 %v1403_v5, %v1402_v41  ;;  %v1429_v63 = vsel %vm831_vm0, %v4115_v10, 0.0  ;;  %v1244_v36 = vmul.f32 1.442695, %v1150_v47  ;;  %v4123_v52 = vpop.f32.mrb[44].mxu0 }
 0x1b9   : > { %5152 = vst [vmem:[#allocation21_spill] sm:$0xff] %v4119_v31  ;;  %v1430_v9 = vsel %vm831_vm0, %v4119_v31, 0.0  ;;  %v1246_v54 = vmul.f32 1.442695, %v1151_v61  ;;  %v1148_v11 = vsub.f32 %v3985_v25, %v966_v4  ;;  %v1149_v0 = vsub.f32 %v3999_v37, %v966_v4  ;;  %v4129_v32 = vpop.f32.mrb[45].mxu0 }
 0x1ba   : > { %v5153_v50 = vrot.slane %v4051_v53, 4  ;;  %v1405_v24 = vrot.slane %v1404_v22, 4  ;;  %v4136_v46 = vadd.f32 %v1430_v9, %v1429_v63  ;;  %3139 = vpow2.f32 %v1244_v36  ;;  %v4138_v47 = vpop.f32.mrb[46].mxu0 }
 0x1bb   : > { %v4140_v5 = vpop.eup %3131  ;;  %3141 = vpow2.f32 %v1246_v54  ;;  %v1240_v61 = vmul.f32 1.442695, %v1148_v11  ;;  %v1242_v25 = vmul.f32 1.442695, %v1149_v0  ;;  %v990_v10 = vrot.slane %v989_v39, 2  ;;  %v4142_v37 = vpop.f32.mrb[47].mxu0 }
 0x1bc   : > { %v4134_v41 = vadd.f32 %v5153_v50, %v4051_v53  ;;  %5154 = vst [vmem:[#allocation22_spill] sm:$0xff] %v4140_v5  ;;  %v4144_v4 = vpop.eup %3133  ;;  %v5156_v53 = vrot.slane %v4068_v59, 4  ;;  %v4151_v63 = vadd.f32 %v1414_v17, %v1413_v62  ;;  %v1420_v36 = vsel %vm831_vm0, %v4140_v5, 0.0 }
 0x1bd   : > { %5155 = vst [vmem:[#allocation23_spill] sm:$0xff] %v4144_v4  ;;  %v979_v9 = vrot.slane %v978_v28, 4  ;;  %v1421_v54 = vsel %vm831_vm0, %v4144_v4, 0.0  ;;  %3143 = vpow2.f32 %v1240_v61  ;;  %v991_v11 = vmax.f32 %v989_v39, %v990_v10  ;;  %v3136_v31 = vpop.eup %3135 }
 0x1be   : > { %v4149_v50 = vadd.f32 %v5156_v53, %v4068_v59  ;;  %v1336_v0 = vadd.f32 %v1335_v56, %v3972_v58  ;;  %v4158_v60 = vadd.f32 %v1405_v24, %v1404_v22  ;;  %v4160_v1 = vadd.f32 %v1421_v54, %v1420_v36 }
 0x1bf   : > { %3145 = vpow2.f32 %v1242_v25  ;;  %v980_v59 = vmax.f32 %v978_v28, %v979_v9  ;;  %v4163_v62 = vmul.f32 %v3136_v31, %v3868_v2  ;;  %v4166_v17 = vmul.f32 %v3136_v31, %v3872_v7 }
 0x1c0   : > { %v992_v53 = vrot.slane %v991_v11, 1  ;;  %v1337_v5 = vrot.slane %v1336_v0, 1  ;;  %v1432_v61 = vrot.slane %v4136_v46, 4  ;;  %v1423_v10 = vrot.slane %v4160_v1, 4  ;;  %v4172_v39 = vpop.f32.mrb[48].mxu0 }
 0x1c1   : > { %5157 = vst [vmem:[#allocation24_spill] sm:$0xff] %v4163_v62  ;;  %5158 = vst [vmem:[#allocation25_spill] sm:$0xff] %v4166_v17  ;;  %v981_v58 = vrot.slane %v980_v59, 2  ;;  %v1003_v56 = vsel %vm831_vm0, %v4054_v51, -inf  ;;  %v3138_v22 = vpop.eup %3137  ;;  %v1702_v2 = vsel %vm831_vm0, %v4163_v62, 0.0  ;;  %v994_v7 = vsel %vm831_vm0, %v4061_v43, -inf }
 0x1c2   : > { %v993_v28 = vmax.f32 %v991_v11, %v992_v53  ;;  %v1338_v24 = vadd.f32 %v1337_v5, %v1336_v0  ;;  %v4178_v31 = vpop.f32.mrb[49].mxu0  ;;  %1703 = vadd.xlane.f32.xlu1 %v1702_v2  ;;  %v4181_v25 = vmul.f32 %v3138_v22, %v3878_v12  ;;  %v1705_v36 = vsel %vm831_vm0, %v4166_v17, 0.0 }
 0x1c3   : > { %v4186_v9 = vmul.f32 %v3138_v22, %v3886_v20  ;;  %v982_v54 = vmax.f32 %v980_v59, %v981_v58  ;;  %v4188_v4 = vpop.f32.mrb[50].mxu0  ;;  %v1004_v0 = vsel %vm831_vm0, %v4066_v55, -inf }
 0x1c4   : > { %5159 = vst [vmem:[#allocation26_spill] sm:$0xff] %v4181_v25  ;;  %v1154_v5 = vsub.f32 %v4015_v15, %v993_v28  ;;  %v1155_v11 = vsub.f32 %v4028_v33, %v993_v28  ;;  %3147 = vrcp.f32 %v1338_v24  ;;  %v4194_v53 = vpop.f32.mrb[51].mxu0  ;;  %v4196_v12 = vpop.eup %3139  ;;  %v1696_v2 = vsel %vm831_vm0, %v4181_v25, 0.0 }
 0x1c5   : > { %5160 = vst [vmem:[#allocation27_spill] sm:$0xff] %v4186_v9  ;;  %5161 = vst [vmem:[#allocation28_spill] sm:$0xff] %v4196_v12  ;;  %v1699_v20 = vsel %vm831_vm0, %v4186_v9, 0.0  ;;  %v983_v59 = vrot.slane %v982_v54, 1  ;;  %v1005_v58 = vmax.f32 %v1003_v56, %v1004_v0  ;;  %v4202_v22 = vpop.eup %3141  ;;  %v1447_v15 = vsel %vm831_vm0, %v4196_v12, 0.0  ;;  %1697 = vadd.xlane.f32.xlu0 %v1696_v2 }
 0x1c6   : > { %5162 = vst [vmem:[#allocation29_spill] sm:$0xff] %v4202_v22  ;;  %v1252_v33 = vmul.f32 1.442695, %v1154_v5  ;;  %v1254_v28 = vmul.f32 1.442695, %v1155_v11  ;;  %v1344_v24 = vrot.slane %v3938_v48, 2  ;;  %1706 = vadd.xlane.f32.xlu1 %v1705_v36 }
 0x1c7   : > { %v1448_v62 = vsel %vm831_vm0, %v4202_v22, 0.0  ;;  %v984_v25 = vmax.f32 %v982_v54, %v983_v59  ;;  %v1006_v17 = vrot.slane %v1005_v58, 4  ;;  %v995_v9 = vsel %vm831_vm0, %v4070_v3, -inf  ;;  %v4211_v56 = vpop.eup %3143 }
 0x1c8   : > { %5163 = vst [vmem:[#allocation30_spill] sm:$0xff] %v4211_v56  ;;  %v4213_v0 = vadd.f32 %v1448_v62, %v1447_v15  ;;  %3149 = vpow2.f32 %v1252_v33  ;;  %v1345_v2 = vadd.f32 %v1344_v24, %v3938_v48  ;;  %v996_v5 = vmax.f32 %v994_v7, %v995_v9  ;;  %v4222_v59 = vpop.f32.mrb[52].mxu0 }
 0x1c9   : > { %v4216_v11 = vpop.eup %3145  ;;  %v1438_v12 = vsel %vm831_vm0, %v4211_v56, 0.0  ;;  %3151 = vpow2.f32 %v1254_v28  ;;  %v1152_v36 = vsub.f32 %v4024_v27, %v984_v25  ;;  %v1153_v54 = vsub.f32 %v4034_v13, %v984_v25  ;;  %1700 = vadd.xlane.f32.xlu0 %v1699_v20  ;;  %v4229_v9 = vpop.f32.mrb[53].mxu0 }
 0x1ca   : > { %5164 = vst [vmem:[#allocation31_spill] sm:$0xff] %v4216_v11  ;;  %v4225_v22 = vadd.f32 %v1432_v61, %v4136_v46  ;;  %v1439_v62 = vsel %vm831_vm0, %v4216_v11, 0.0  ;;  %v1007_v48 = vmax.f32 %v1005_v58, %v1006_v17  ;;  %v1346_v7 = vrot.slane %v1345_v2, 1  ;;  %v4231_v27 = vpop.f32.mrb[54].mxu0 }
 0x1cb   : > { %v1440_v15 = vadd.f32 %v1439_v62, %v1438_v12  ;;  %v1248_v33 = vmul.f32 1.442695, %v1152_v36  ;;  %v1250_v28 = vmul.f32 1.442695, %v1153_v54  ;;  %v997_v24 = vrot.slane %v996_v5, 4  ;;  %v4237_v56 = vpop.f32.mrb[55].mxu0 }
 0x1cc   : > { %5165 = vst [vmem:[#allocation32_spill] sm:$0xff] %v4225_v22  ;;  %v4234_v13 = vadd.f32 %v1423_v10, %v4160_v1  ;;  %v1008_v25 = vrot.slane %v1007_v48, 2  ;;  %v1347_v46 = vadd.f32 %v1346_v7, %v1345_v2  ;;  %v1353_v61 = vrot.slane %v4020_v18, 2 }
 0x1cd   : > { %v1450_v17 = vrot.slane %v4213_v0, 4  ;;  %v1441_v20 = vrot.slane %v1440_v15, 4  ;;  %3153 = vpow2.f32 %v1248_v33  ;;  %v998_v58 = vmax.f32 %v996_v5, %v997_v24 }
 0x1ce   : > { %5166 = vst [vmem:[#allocation33_spill] sm:$0xff] %v4234_v13  ;;  %v3148_v12 = vpop.eup %3147  ;;  %3155 = vpow2.f32 %v1250_v28  ;;  %v1009_v36 = vmax.f32 %v1007_v48, %v1008_v25  ;;  %v1354_v54 = vadd.f32 %v1353_v61, %v4020_v18  ;;  %v1021_v1 = vsel %vm831_vm0, %v4083_v29, -inf }
 0x1cf   : > { %v4244_v10 = vmul.f32 %v3148_v12, %v3920_v57  ;;  %v4247_v2 = vmul.f32 %v3148_v12, %v3912_v49  ;;  %3157 = vrcp.f32 %v1347_v46  ;;  %v1012_v62 = vsel %vm831_vm0, %v4090_v45, -inf }
 0x1d0   : > { %v1010_v7 = vrot.slane %v1009_v36, 1  ;;  %v999_v5 = vrot.slane %v998_v58, 2  ;;  %v1355_v33 = vrot.slane %v1354_v54, 1  ;;  %v1022_v48 = vsel %vm831_vm0, %v4092_v8, -inf  ;;  %v4258_v24 = vpop.f32.mrb[56].mxu0 }
 0x1d1   : > { %5167 = vst [vmem:[#allocation34_spill] sm:$0xff] %v4244_v10  ;;  %5168 = vst [vmem:[#allocation35_spill] sm:$0xff] %v4247_v2  ;;  %v1711_v18 = vsel %vm831_vm0, %v4244_v10, 0.0  ;;  %v1708_v57 = vsel %vm831_vm0, %v4247_v2, 0.0  ;;  %v1023_v28 = vmax.f32 %v1021_v1, %v1022_v48  ;;  %v1362_v49 = vrot.slane %v4018_v16, 2  ;;  %v4264_v22 = vpop.f32.mrb[57].mxu0 }
 0x1d2   : > { %5169 = vst [vmem:[#allocation36_spill] sm:$0xff] %v4258_v24  ;;  %v4260_v25 = vpop.eup %3149  ;;  %1712 = vadd.xlane.f32.xlu1 %v1711_v18  ;;  %1709 = vadd.xlane.f32.xlu0 %v1708_v57  ;;  %v1011_v46 = vmax.f32 %v1009_v36, %v1010_v7  ;;  %v1000_v61 = vmax.f32 %v998_v58, %v999_v5  ;;  %v1013_v11 = vsel %vm831_vm0, %v4099_v26, -inf  ;;  %5171 = vst [vmem:[#allocation38_spill] sm:$0xff] %v4264_v22  ;;  %v4271_v13 = vpop.f32.mrb[58].mxu0 }
 0x1d3   : > { %5170 = vst [vmem:[#allocation37_spill] sm:$0xff] %v4260_v25  ;;  %v1356_v12 = vadd.f32 %v1355_v33, %v1354_v54  ;;  %v4266_v10 = vpop.eup %3151  ;;  %v1465_v1 = vsel %vm831_vm0, %v4260_v25, 0.0  ;;  %v1024_v48 = vrot.slane %v1023_v28, 4  ;;  %v1363_v2 = vadd.f32 %v1362_v49, %v4018_v16  ;;  %v4277_v5 = vpop.f32.mrb[59].mxu0 }
 0x1d4   : > { %5172 = vst [vmem:[#allocation39_spill] sm:$0xff] %v4266_v10  ;;  %v1014_v24 = vmax.f32 %v1012_v62, %v1013_v11  ;;  %v1466_v58 = vsel %vm831_vm0, %v4266_v10, 0.0  ;;  %v1158_v36 = vsub.f32 %v4054_v51, %v1011_v46  ;;  %v1159_v54 = vsub.f32 %v4066_v55, %v1011_v46 }
 0x1d5   : > { %v1001_v7 = vrot.slane %v1000_v61, 1  ;;  %v4279_v33 = vadd.f32 %v1466_v58, %v1465_v1  ;;  %3159 = vrcp.f32 %v1356_v12  ;;  %v1025_v18 = vmax.f32 %v1023_v28, %v1024_v48 }
 0x1d6   : > { %v1364_v57 = vrot.slane %v1363_v2, 1  ;;  %v4282_v16 = vadd.f32 %v1450_v17, %v4213_v0  ;;  %v1260_v11 = vmul.f32 1.442695, %v1158_v36  ;;  %v1262_v62 = vmul.f32 1.442695, %v1159_v54 }
 0x1d7   : > { %v1002_v49 = vmax.f32 %v1000_v61, %v1001_v7  ;;  %v4284_v25 = vpop.eup %3153  ;;  %v4286_v10 = vadd.f32 %v1441_v20, %v1440_v15  ;;  %v1026_v51 = vrot.slane %v1025_v18, 2  ;;  %v1015_v46 = vrot.slane %v1014_v24, 4 }
 0x1d8   : > { %v1365_v55 = vadd.f32 %v1364_v57, %v1363_v2  ;;  %v4288_v22 = vpop.eup %3155  ;;  %v1456_v12 = vsel %vm831_vm0, %v4284_v25, 0.0  ;;  %3161 = vpow2.f32 %v1260_v11  ;;  %v1371_v20 = vrot.slane %v4073_v34, 2  ;;  %v4297_v2 = vpop.f32.mrb[60].mxu0 }
 0x1d9   : > { %v1156_v28 = vsub.f32 %v4061_v43, %v1002_v49  ;;  %v1157_v0 = vsub.f32 %v4070_v3, %v1002_v49  ;;  %v3158_v17 = vpop.eup %3157  ;;  %v1457_v61 = vsel %vm831_vm0, %v4288_v22, 0.0  ;;  %3163 = vpow2.f32 %v1262_v62  ;;  %v4307_v3 = vpop.f32.mrb[61].mxu0 }
 0x1da   : > { %v1027_v15 = vmax.f32 %v1025_v18, %v1026_v51  ;;  %v4299_v1 = vadd.f32 %v1457_v61, %v1456_v12  ;;  %v4302_v48 = vmul.f32 %v3158_v17, %v3906_v42  ;;  %v4305_v58 = vmul.f32 %v3158_v17, %v3900_v38  ;;  %v4309_v18 = vpop.f32.mrb[62].mxu0 }
 0x1db   : > { %v1256_v43 = vmul.f32 1.442695, %v1156_v28  ;;  %v1258_v36 = vmul.f32 1.442695, %v1157_v0  ;;  %3165 = vrcp.f32 %v1365_v55  ;;  %v1016_v7 = vmax.f32 %v1014_v24, %v1015_v46  ;;  %v4316_v38 = vpop.f32.mrb[63].mxu0 }
 0x1dc   : > { %5173 = vst [vmem:[#allocation40_spill] sm:$0xff] %v4302_v48  ;;  %5174 = vst [vmem:[#allocation41_spill] sm:$0xff] %v4305_v58  ;;  %v1028_v54 = vrot.slane %v1027_v15, 1  ;;  %v1717_v11 = vsel %vm831_vm0, %v4302_v48, 0.0  ;;  %v1714_v42 = vsel %vm831_vm0, %v4305_v58, 0.0  ;;  %v1372_v24 = vadd.f32 %v1371_v20, %v4073_v34 }
 0x1dd   : > { %3167 = vpow2.f32 %v1256_v43  ;;  %1718 = vadd.xlane.f32.xlu1 %v1717_v11  ;;  %1715 = vadd.xlane.f32.xlu0 %v1714_v42  ;;  %v1017_v49 = vrot.slane %v1016_v7, 2  ;;  %v1459_v51 = vrot.slane %v4299_v1, 4  ;;  %v1039_v55 = vsel %vm831_vm0, %v4123_v52, -inf }
 0x1de   : > { %3169 = vpow2.f32 %v1258_v36  ;;  %v1029_v62 = vmax.f32 %v1027_v15, %v1028_v54  ;;  %v1030_v46 = vsel %vm831_vm0, %v4129_v32, -inf  ;;  %v1040_v12 = vsel %vm831_vm0, %v4138_v47, -inf }
 0x1df   : > { %v3160_v28 = vpop.eup %3159  ;;  %v1018_v61 = vmax.f32 %v1016_v7, %v1017_v49  ;;  %v1373_v15 = vrot.slane %v1372_v24, 1  ;;  %v1041_v43 = vmax.f32 %v1039_v55, %v1040_v12  ;;  %v1380_v36 = vrot.slane %v4022_v23, 2 }
 0x1e0   : > { %v1162_v0 = vsub.f32 %v4083_v29, %v1029_v62  ;;  %v1163_v17 = vsub.f32 %v4092_v8, %v1029_v62  ;;  %v4329_v34 = vmul.f32 %v3160_v28, %v3956_v35  ;;  %v4332_v20 = vmul.f32 %v3160_v28, %v3948_v30 }
 0x1e1   : > { %v1019_v42 = vrot.slane %v1018_v61, 1  ;;  %v1374_v57 = vadd.f32 %v1373_v15, %v1372_v24  ;;  %v1042_v35 = vrot.slane %v1041_v43, 4  ;;  %v1381_v7 = vadd.f32 %v1380_v36, %v4022_v23 }
 0x1e2   : > { %5175 = vst [vmem:[#allocation42_spill] sm:$0xff] %v4329_v34  ;;  %5176 = vst [vmem:[#allocation43_spill] sm:$0xff] %v4332_v20  ;;  %v1268_v54 = vmul.f32 1.442695, %v1162_v0  ;;  %v1270_v11 = vmul.f32 1.442695, %v1163_v17  ;;  %v4335_v58 = vpop.eup %3161 }
 0x1e3   : > { %v1723_v29 = vsel %vm831_vm0, %v4329_v34, 0.0  ;;  %v1720_v8 = vsel %vm831_vm0, %v4332_v20, 0.0  ;;  %v4342_v30 = vpop.eup %3163  ;;  %v1483_v62 = vsel %vm831_vm0, %v4335_v58, 0.0  ;;  %v1020_v49 = vmax.f32 %v1018_v61, %v1019_v42 }
 0x1e4   : > { %1724 = vadd.xlane.f32.xlu1 %v1723_v29  ;;  %1721 = vadd.xlane.f32.xlu0 %v1720_v8  ;;  %3171 = vpow2.f32 %v1268_v54  ;;  %v1031_v24 = vsel %vm831_vm0, %v4142_v37, -inf  ;;  %v1484_v55 = vsel %vm831_vm0, %v4342_v30, 0.0  ;;  %v1043_v12 = vmax.f32 %v1041_v43, %v1042_v35 }
 0x1e5   : > { %3173 = vpow2.f32 %v1270_v11  ;;  %v1382_v28 = vrot.slane %v1381_v7, 1  ;;  %v3166_v0 = vpop.eup %3165  ;;  %v1485_v23 = vadd.f32 %v1484_v55, %v1483_v62  ;;  %v1160_v17 = vsub.f32 %v4090_v45, %v1020_v49 }
 0x1e6   : > { %v1161_v15 = vsub.f32 %v4099_v26, %v1020_v49  ;;  %3175 = vrcp.f32 %v1374_v57  ;;  %v4355_v61 = vmul.f32 %v3166_v0, %v3942_v19  ;;  %v4358_v54 = vmul.f32 %v3166_v0, %v3936_v40 }
 0x1e7   : > { %v4352_v36 = vpop.eup %3167  ;;  %v1044_v42 = vrot.slane %v1043_v12, 2  ;;  %v1383_v29 = vadd.f32 %v1382_v28, %v1381_v7  ;;  %v1486_v43 = vrot.slane %v1485_v23, 4  ;;  %v1264_v45 = vmul.f32 1.442695, %v1160_v17 }
 0x1e8   : > { %5177 = vst [vmem:[#allocation44_spill] sm:$0xff] %v4355_v61  ;;  %5178 = vst [vmem:[#allocation45_spill] sm:$0xff] %v4358_v54  ;;  %v4360_v11 = vpop.eup %3169  ;;  %v1474_v8 = vsel %vm831_vm0, %v4352_v36, 0.0  ;;  %v1266_v35 = vmul.f32 1.442695, %v1161_v15  ;;  %v1729_v19 = vsel %vm831_vm0, %v4355_v61, 0.0  ;;  %v1032_v55 = vmax.f32 %v1030_v46, %v1031_v24 }
 0x1e9   : > { %v1475_v26 = vsel %vm831_vm0, %v4360_v11, 0.0  ;;  %v1726_v40 = vsel %vm831_vm0, %v4358_v54, 0.0  ;;  %v1045_v57 = vmax.f32 %v1043_v12, %v1044_v42  ;;  %v5179_v7 = vrot.slane %v4279_v33, 4  ;;  %1730 = vadd.xlane.f32.xlu1 %v1729_v19 }
 0x1ea   : > { %v4375_v49 = vadd.f32 %v1475_v26, %v1474_v8  ;;  %1727 = vadd.xlane.f32.xlu0 %v1726_v40  ;;  %3177 = vpow2.f32 %v1264_v45  ;;  %v1389_v0 = vrot.slane %v4149_v50, 2  ;;  %v1057_v17 = vsel %vm831_vm0, %v4172_v39, -inf }
 0x1eb   : > { %v4373_v62 = vadd.f32 %v5179_v7, %v4279_v33  ;;  %3179 = vpow2.f32 %v1266_v35  ;;  %v1046_v28 = vrot.slane %v1045_v57, 1  ;;  %v4381_v12 = vadd.f32 %v1459_v51, %v4299_v1 }
 0x1ec   : > { %v4383_v15 = vadd.f32 %v1486_v43, %v1485_v23  ;;  %3181 = vrcp.f32 %v1383_v29  ;;  %v1033_v33 = vrot.slane %v1032_v55, 4  ;;  %v1390_v8 = vadd.f32 %v1389_v0, %v4149_v50 }
 0x1ed   : > { %v1047_v42 = vmax.f32 %v1045_v57, %v1046_v28  ;;  %v1058_v46 = vsel %vm831_vm0, %v4188_v4, -inf  ;;  %v1398_v24 = vrot.slane %v4134_v41, 2  ;;  %v1477_v35 = vrot.slane %v4375_v49, 4 }
 0x1ee   : > { %v4389_v45 = vpop.eup %3171  ;;  %v1034_v26 = vmax.f32 %v1032_v55, %v1033_v33  ;;  %v1059_v19 = vmax.f32 %v1057_v17, %v1058_v46  ;;  %v1049_v1 = vsel %vm831_vm0, %v4194_v53, -inf  ;;  %v1391_v43 = vrot.slane %v1390_v8, 1 }
 0x1ef   : > { %v4394_v51 = vpop.eup %3173  ;;  %v1501_v23 = vsel %vm831_vm0, %v4389_v45, 0.0  ;;  %v1166_v50 = vsub.f32 %v4123_v52, %v1047_v42  ;;  %v1167_v29 = vsub.f32 %v4138_v47, %v1047_v42  ;;  %v1399_v28 = vadd.f32 %v1398_v24, %v4134_v41 }
 0x1f0   : > { %v3176_v40 = vpop.eup %3175  ;;  %v1502_v57 = vsel %vm831_vm0, %v4394_v51, 0.0  ;;  %v1035_v7 = vrot.slane %v1034_v26, 2  ;;  %v1060_v55 = vrot.slane %v1059_v19, 4  ;;  %v1392_v47 = vadd.f32 %v1391_v43, %v1390_v8 }
 0x1f1   : > { %v1503_v0 = vadd.f32 %v1502_v57, %v1501_v23  ;;  %v4404_v17 = vmul.f32 %v3176_v40, %v4005_v44  ;;  %v4407_v33 = vmul.f32 %v3176_v40, %v4001_v14  ;;  %v1276_v46 = vmul.f32 1.442695, %v1166_v50 }
 0x1f2   : > { %v1278_v52 = vmul.f32 1.442695, %v1167_v29  ;;  %v1036_v54 = vmax.f32 %v1034_v26, %v1035_v7  ;;  %v1061_v42 = vmax.f32 %v1059_v19, %v1060_v55  ;;  %v1048_v41 = vsel %vm831_vm0, %v4178_v31, -inf }
 0x1f3   : > { %5180 = vst [vmem:[#allocation46_spill] sm:$0xff] %v4404_v17  ;;  %5181 = vst [vmem:[#allocation47_spill] sm:$0xff] %v4407_v33  ;;  %v1735_v61 = vsel %vm831_vm0, %v4404_v17, 0.0  ;;  %v1732_v20 = vsel %vm831_vm0, %v4407_v33, 0.0  ;;  %3183 = vpow2.f32 %v1276_v46  ;;  %v1400_v26 = vrot.slane %v1399_v28, 1 }
 0x1f4   : > { %v4415_v44 = vpop.eup %3177  ;;  %1736 = vadd.xlane.f32.xlu1 %v1735_v61  ;;  %1733 = vadd.xlane.f32.xlu0 %v1732_v20  ;;  %3185 = vpow2.f32 %v1278_v52  ;;  %v1037_v14 = vrot.slane %v1036_v54, 1  ;;  %v1062_v24 = vrot.slane %v1061_v42, 2  ;;  %v1504_v19 = vrot.slane %v1503_v0, 4 }
 0x1f5   : > { %v4417_v8 = vpop.eup %3179  ;;  %v1492_v23 = vsel %vm831_vm0, %v4415_v44, 0.0  ;;  %3187 = vrcp.f32 %v1392_v47  ;;  %v1050_v50 = vmax.f32 %v1048_v41, %v1049_v1  ;;  %v1401_v61 = vadd.f32 %v1400_v26, %v1399_v28 }
 0x1f6   : > { %v3182_v29 = vpop.eup %3181  ;;  %v1493_v43 = vsel %vm831_vm0, %v4417_v8, 0.0  ;;  %v1038_v40 = vmax.f32 %v1036_v54, %v1037_v14  ;;  %v1063_v57 = vmax.f32 %v1061_v42, %v1062_v24  ;;  %v4434_v41 = vadd.f32 %v1477_v35, %v4375_v49 }
 0x1f7   : > { %v4423_v20 = vadd.f32 %v1493_v43, %v1492_v23  ;;  %v4426_v7 = vmul.f32 %v3182_v29, %v3993_v21  ;;  %v4429_v55 = vmul.f32 %v3182_v29, %v3987_v6  ;;  %v1051_v46 = vrot.slane %v1050_v50, 4  ;;  %v3076_v23 = vld [vmem:[#allocation7 + $0x8] sm:$0xff]  }
 0x1f8   : > { %v1164_v52 = vsub.f32 %v4129_v32, %v1038_v40  ;;  %v1165_v1 = vsub.f32 %v4142_v37, %v1038_v40  ;;  %v1064_v47 = vrot.slane %v1063_v57, 1  ;;  %3189 = vrcp.f32 %v1401_v61  ;;  %v3075_v37 = vld [vmem:[#allocation7] sm:$0xff]   ;;  %v3077_v61 = vld [vmem:[#allocation7 + $0x10] sm:$0xff]  }
 0x1f9   : > { %5182 = vst [vmem:[#allocation48_spill] sm:$0xff] %v4426_v7  ;;  %5183 = vst [vmem:[#allocation49_spill] sm:$0xff] %v4429_v55  ;;  %v1741_v54 = vsel %vm831_vm0, %v4426_v7, 0.0  ;;  %v1738_v21 = vsel %vm831_vm0, %v4429_v55, 0.0  ;;  %v1052_v28 = vmax.f32 %v1050_v50, %v1051_v46  ;;  %v1407_v32 = vrot.slane %v4158_v60, 2  ;;  %2892 = vmatprep.subr.bf16.mxu1 %v3075_v37  ;;  %v5200_v7 = vld [vmem:[#allocation18_spill] sm:$0xff] }
 0x1fa   : > { %1742 = vadd.xlane.f32.xlu1 %v1741_v54  ;;  %1739 = vadd.xlane.f32.xlu0 %v1738_v21  ;;  %v1272_v6 = vmul.f32 1.442695, %v1164_v52  ;;  %v1274_v42 = vmul.f32 1.442695, %v1165_v1  ;;  %v1065_v14 = vmax.f32 %v1063_v57, %v1064_v47  ;;  %v4441_v24 = vadd.f32 %v1504_v19, %v1503_v0 }
 0x1fb   : > { %v1053_v35 = vrot.slane %v1052_v28, 2  ;;  %v1075_v26 = vsel %vm831_vm0, %v4222_v59, -inf  ;;  %v1408_v43 = vadd.f32 %v1407_v32, %v4158_v60  ;;  %v1076_v19 = vsel %vm831_vm0, %v4231_v27, -inf  ;;  %2893 = vmatpush3.bf16.msra.mxu1 %v3075_v37  ;;  %v5186_v32 = vld [vmem:[#allocation14_spill] sm:$0xff] }
 0x1fc   : > { %3191 = vpow2.f32 %v1272_v6  ;;  %v1170_v50 = vsub.f32 %v4172_v39, %v1065_v14  ;;  %v1171_v29 = vsub.f32 %v4188_v4, %v1065_v14  ;;  %v1416_v57 = vrot.slane %v4151_v63, 2  ;;  %2894 = vmatprep.subr.bf16.mxu1 %v3076_v23 }
 0x1fd   : > { %v4449_v40 = vpop.eup %3183  ;;  %3193 = vpow2.f32 %v1274_v42  ;;  %v1054_v0 = vmax.f32 %v1052_v28, %v1053_v35  ;;  %v1409_v60 = vrot.slane %v1408_v43, 1  ;;  %v1077_v21 = vmax.f32 %v1075_v26, %v1076_v19  ;;  %v5184_v42 = vld [vmem:[#allocation15_spill] sm:$0xff] }
 0x1fe   : > { %v4454_v46 = vpop.eup %3185  ;;  %v1519_v39 = vsel %vm831_vm0, %v4449_v40, 0.0  ;;  %v1284_v4 = vmul.f32 1.442695, %v1170_v50  ;;  %v1286_v52 = vmul.f32 1.442695, %v1171_v29  ;;  %v1417_v28 = vadd.f32 %v1416_v57, %v4151_v63  ;;  %v3078_v57 = vld [vmem:[#allocation7 + $0x18] sm:$0xff]  }
 0x1ff   : > { %v3188_v1 = vpop.eup %3187  ;;  %v1520_v47 = vsel %vm831_vm0, %v4454_v46, 0.0  ;;  %v1055_v54 = vrot.slane %v1054_v0, 1  ;;  %v1410_v50 = vadd.f32 %v1409_v60, %v1408_v43  ;;  %v1078_v29 = vrot.slane %v1077_v21, 4  ;;  %2895 = vmatpush3.bf16.msra.mxu1 %v3076_v23  ;;  %v5190_v43 = vld [vmem:[#allocation12_spill] sm:$0xff] }
 0x200   : > { %v1521_v6 = vadd.f32 %v1520_v47, %v1519_v39  ;;  %v4462_v14 = vmul.f32 %v3188_v1, %v5184_v42  ;;  %v4465_v37 = vmul.f32 %v3188_v1, %v5186_v32  ;;  %3195 = vpow2.f32 %v1284_v4  ;;  %2896 = vmatprep.subr.bf16.mxu1 %v3077_v61  ;;  %v5188_v39 = vld [vmem:[#allocation13_spill] sm:$0xff] }
 0x201   : > { %3197 = vpow2.f32 %v1286_v52  ;;  %v1056_v35 = vmax.f32 %v1054_v0, %v1055_v54  ;;  %v1066_v26 = vsel %vm831_vm0, %v4229_v9, -inf  ;;  %v1418_v19 = vrot.slane %v1417_v28, 1 }
 0x202   : > { %5185 = vst [vmem:[#allocation15_spill] sm:$0xff] %v4462_v14  ;;  %5187 = vst [vmem:[#allocation14_spill] sm:$0xff] %v4465_v37  ;;  %v3190_v49 = vpop.eup %3189  ;;  %v1747_v55 = vsel %vm831_vm0, %v4462_v14, 0.0  ;;  %v1744_v63 = vsel %vm831_vm0, %v4465_v37, 0.0  ;;  %3199 = vrcp.f32 %v1410_v50  ;;  %v1522_v52 = vrot.slane %v1521_v6, 4 }
 0x203   : > { %1748 = vadd.xlane.f32.xlu1 %v1747_v55  ;;  %1745 = vadd.xlane.f32.xlu0 %v1744_v63  ;;  %v4474_v0 = vmul.f32 %v3190_v49, %v5188_v39  ;;  %v4477_v23 = vmul.f32 %v3190_v49, %v5190_v43  ;;  %v1168_v4 = vsub.f32 %v4178_v31, %v1056_v35  ;;  %v1067_v32 = vsel %vm831_vm0, %v4237_v56, -inf }
 0x204   : > { %v1169_v60 = vsub.f32 %v4194_v53, %v1056_v35  ;;  %v1079_v1 = vmax.f32 %v1077_v21, %v1078_v29  ;;  %v1419_v47 = vadd.f32 %v1418_v19, %v1417_v28  ;;  %2897 = vmatpush3.bf16.msra.mxu1 %v3077_v61  ;;  %v1068_v63 = vmax.f32 %v1066_v26, %v1067_v32  ;;  %v5192_v28 = vld [vmem:[#allocation33_spill] sm:$0xff]  ;;  %v5193_v29 = vld [vmem:[#allocation36_spill] sm:$0xff] }
 0x205   : > { %5189 = vst [vmem:[#allocation13_spill] sm:$0xff] %v4474_v0  ;;  %5191 = vst [vmem:[#allocation12_spill] sm:$0xff] %v4477_v23  ;;  %v1753_v54 = vsel %vm831_vm0, %v4474_v0, 0.0  ;;  %v1750_v55 = vsel %vm831_vm0, %v4477_v23, 0.0  ;;  %v1280_v42 = vmul.f32 1.442695, %v1168_v4  ;;  %2898 = vmatprep.subr.bf16.mxu1 %v3078_v57  ;;  %v4511_v0 = vadd.f32 %v1522_v52, %v1521_v6 }
 0x206   : > { %v4487_v49 = vpop.eup %3191  ;;  %v1282_v31 = vmul.f32 1.442695, %v1169_v60  ;;  %v1080_v50 = vrot.slane %v1079_v1, 2  ;;  %3201 = vrcp.f32 %v1419_v47  ;;  %v1425_v35 = vrot.slane %v5192_v28, 2  ;;  %v5198_v52 = vld [vmem:[#allocation19_spill] sm:$0xff] }
 0x207   : > { %v4489_v53 = vpop.eup %3193  ;;  %v1510_v21 = vsel %vm831_vm0, %v4487_v49, 0.0  ;;  %1754 = vadd.xlane.f32.xlu1 %v1753_v54  ;;  %1751 = vadd.xlane.f32.xlu0 %v1750_v55  ;;  %3203 = vpow2.f32 %v1280_v42  ;;  %v1093_v61 = vsel %vm831_vm0, %v5193_v29, -inf  ;;  %v1069_v26 = vrot.slane %v1068_v63, 4 }
 0x208   : > { %v1511_v19 = vsel %vm831_vm0, %v4489_v53, 0.0  ;;  %3205 = vpow2.f32 %v1282_v31  ;;  %v1081_v39 = vmax.f32 %v1079_v1, %v1080_v50  ;;  %v5194_v43 = vrot.slane %v4423_v20, 4  ;;  %2899 = vmatpush3.bf16.msra.mxu1 %v3078_v57  ;;  %v5196_v31 = vld [vmem:[#allocation32_spill] sm:$0xff] }
 0x209   : > { %v1512_v60 = vadd.f32 %v1511_v19, %v1510_v21  ;;  %v1426_v47 = vadd.f32 %v1425_v35, %v5192_v28  ;;  %v1094_v54 = vsel %vm831_vm0, %v4271_v13, -inf  ;;  %v1070_v32 = vmax.f32 %v1068_v63, %v1069_v26  ;;  %v5197_v28 = vld [vmem:[#allocation38_spill] sm:$0xff] }
 0x20a   : > { %v4501_v4 = vadd.f32 %v5194_v43, %v4423_v20  ;;  %v4506_v55 = vpop.eup %3195  ;;  %v1082_v42 = vrot.slane %v1081_v39, 1  ;;  %v1095_v23 = vmax.f32 %v1093_v61, %v1094_v54  ;;  %v1434_v1 = vrot.slane %v5196_v31, 2 }
 0x20b   : > { %5195 = vst [vmem:[#allocation33_spill] sm:$0xff] %v4506_v55  ;;  %v4509_v50 = vpop.eup %3197  ;;  %v1537_v20 = vsel %vm831_vm0, %v4506_v55, 0.0  ;;  %v1427_v21 = vrot.slane %v1426_v47, 1  ;;  %v1084_v35 = vsel %vm831_vm0, %v5197_v28, -inf  ;;  %v1071_v43 = vrot.slane %v1070_v32, 2 }
 0x20c   : > { %v1538_v57 = vsel %vm831_vm0, %v4509_v50, 0.0  ;;  %v1083_v19 = vmax.f32 %v1081_v39, %v1082_v42  ;;  %v1096_v63 = vrot.slane %v1095_v23, 4  ;;  %v3200_v61 = vpop.eup %3199  ;;  %v1513_v26 = vrot.slane %v1512_v60, 4 }
 0x20d   : > { %v1539_v54 = vadd.f32 %v1538_v57, %v1537_v20  ;;  %v1428_v37 = vadd.f32 %v1427_v21, %v1426_v47  ;;  %v1435_v6 = vadd.f32 %v1434_v1, %v5196_v31  ;;  %v4521_v14 = vmul.f32 %v3200_v61, %v5198_v52 }
 0x20e   : > { %v4524_v33 = vmul.f32 %v3200_v61, %v5200_v7  ;;  %v1174_v17 = vsub.f32 %v4222_v59, %v1083_v19  ;;  %v1175_v34 = vsub.f32 %v4231_v27, %v1083_v19  ;;  %v1072_v48 = vmax.f32 %v1070_v32, %v1071_v43  ;;  %v5202_v27 = vld [vmem:[#allocation17_spill] sm:$0xff] }
 0x20f   : > { %5199 = vst [vmem:[#allocation36_spill] sm:$0xff] %v4521_v14  ;;  %3207 = vrcp.f32 %v1428_v37  ;;  %v1097_v39 = vmax.f32 %v1095_v23, %v1096_v63  ;;  %v1085_v42 = vsel %vm831_vm0, %v4277_v5, -inf  ;;  %v1759_v47 = vsel %vm831_vm0, %v4521_v14, 0.0  ;;  %v5204_v23 = vld [vmem:[#allocation16_spill] sm:$0xff] }
 0x210   : > { %5201 = vst [vmem:[#allocation32_spill] sm:$0xff] %v4524_v33  ;;  %v3202_v20 = vpop.eup %3201  ;;  %v1756_v31 = vsel %vm831_vm0, %v4524_v33, 0.0  ;;  %v1292_v1 = vmul.f32 1.442695, %v1174_v17  ;;  %v1294_v7 = vmul.f32 1.442695, %v1175_v34  ;;  %1760 = vadd.xlane.f32.xlu1 %v1759_v47  ;;  %v1086_v33 = vmax.f32 %v1084_v35, %v1085_v42 }
 0x211   : > { %v4534_v21 = vpop.eup %3203  ;;  %v1540_v59 = vrot.slane %v1539_v54, 4  ;;  %1757 = vadd.xlane.f32.xlu0 %v1756_v31  ;;  %v4537_v37 = vmul.f32 %v3202_v20, %v5202_v27  ;;  %v4540_v32 = vmul.f32 %v3202_v20, %v5204_v23  ;;  %v1073_v57 = vrot.slane %v1072_v48, 1 }
 0x212   : > { %v4542_v19 = vpop.eup %3205  ;;  %v1528_v43 = vsel %vm831_vm0, %v4534_v21, 0.0  ;;  %3209 = vpow2.f32 %v1292_v1  ;;  %v1098_v17 = vrot.slane %v1097_v39, 2  ;;  %v1436_v34 = vrot.slane %v1435_v6, 1 }
 0x213   : > { %5203 = vst [vmem:[#allocation38_spill] sm:$0xff] %v4537_v37  ;;  %v1529_v63 = vsel %vm831_vm0, %v4542_v19, 0.0  ;;  %3211 = vpow2.f32 %v1294_v7  ;;  %v1765_v61 = vsel %vm831_vm0, %v4537_v37, 0.0  ;;  %v1762_v52 = vsel %vm831_vm0, %v4540_v32, 0.0 }
 0x214   : > { %v4552_v20 = vadd.f32 %v1529_v63, %v1528_v43  ;;  %v1074_v47 = vmax.f32 %v1072_v48, %v1073_v57  ;;  %v1099_v31 = vmax.f32 %v1097_v39, %v1098_v17  ;;  %v1437_v27 = vadd.f32 %v1436_v34, %v1435_v6  ;;  %1766 = vadd.xlane.f32.xlu1 %v1765_v61  ;;  %v5205_v17 = vld [vmem:[#allocation23_spill] sm:$0xff] }
 0x215   : > { %v4554_v23 = vadd.f32 %v1513_v26, %v1512_v60  ;;  %v4556_v1 = vadd.f32 %v1540_v59, %v1539_v54  ;;  %1763 = vadd.xlane.f32.xlu0 %v1762_v52  ;;  %v1443_v7 = vrot.slane %v4286_v10, 2  ;;  %v1111_v43 = vsel %vm831_vm0, %v4297_v2, -inf }
 0x216   : > { %v1172_v14 = vsub.f32 %v4229_v9, %v1074_v47  ;;  %v1173_v37 = vsub.f32 %v4237_v56, %v1074_v47  ;;  %v1100_v55 = vrot.slane %v1099_v31, 1  ;;  %3213 = vrcp.f32 %v1437_v27 }
 0x217   : > { %v1087_v48 = vrot.slane %v1086_v33, 4  ;;  %v1444_v60 = vadd.f32 %v1443_v7, %v4286_v10  ;;  %v1112_v26 = vsel %vm831_vm0, %v4309_v18, -inf  ;;  %v1102_v39 = vsel %vm831_vm0, %v4307_v3, -inf  ;;  %v5206_v10 = vld [vmem:[#allocation22_spill] sm:$0xff] }
 0x218   : > { %v1288_v54 = vmul.f32 1.442695, %v1172_v14  ;;  %v1290_v6 = vmul.f32 1.442695, %v1173_v37  ;;  %v1101_v35 = vmax.f32 %v1099_v31, %v1100_v55  ;;  %v1113_v59 = vmax.f32 %v1111_v43, %v1112_v26 }
 0x219   : > { %v3208_v9 = vpop.eup %3207  ;;  %v1088_v42 = vmax.f32 %v1086_v33, %v1087_v48  ;;  %v1445_v56 = vrot.slane %v1444_v60, 1  ;;  %v1452_v57 = vrot.slane %v4282_v16, 2 }
 0x21a   : > { %3215 = vpow2.f32 %v1288_v54  ;;  %v4570_v34 = vmul.f32 %v3208_v9, %v5205_v17  ;;  %v4573_v63 = vmul.f32 %v3208_v9, %v5206_v10  ;;  %v1178_v14 = vsub.f32 %v5193_v29, %v1101_v35 }
 0x21b   : > { %3217 = vpow2.f32 %v1290_v6  ;;  %v1179_v55 = vsub.f32 %v4271_v13, %v1101_v35  ;;  %v1089_v37 = vrot.slane %v1088_v42, 2  ;;  %v1446_v61 = vadd.f32 %v1445_v56, %v1444_v60 }
 0x21c   : > { %v4577_v52 = vpop.eup %3209  ;;  %v1771_v33 = vsel %vm831_vm0, %v4570_v34, 0.0  ;;  %v1768_v47 = vsel %vm831_vm0, %v4573_v63, 0.0  ;;  %v1300_v31 = vmul.f32 1.442695, %v1178_v14  ;;  %v1114_v27 = vrot.slane %v1113_v59, 4 }
 0x21d   : > { %v4583_v7 = vpop.eup %3211  ;;  %v1555_v29 = vsel %vm831_vm0, %v4577_v52, 0.0  ;;  %1772 = vadd.xlane.f32.xlu1 %v1771_v33  ;;  %1769 = vadd.xlane.f32.xlu0 %v1768_v47  ;;  %v1302_v13 = vmul.f32 1.442695, %v1179_v55  ;;  %v1090_v43 = vmax.f32 %v1088_v42, %v1089_v37  ;;  %3219 = vrcp.f32 %v1446_v61  ;;  %v5207_v61 = vld [vmem:[#allocation21_spill] sm:$0xff] }
 0x21e   : > { %v1556_v48 = vsel %vm831_vm0, %v4583_v7, 0.0  ;;  %3221 = vpow2.f32 %v1300_v31  ;;  %v1115_v60 = vmax.f32 %v1113_v59, %v1114_v27  ;;  %v1453_v26 = vadd.f32 %v1452_v57, %v4282_v16  ;;  %v5209_v57 = vld [vmem:[#allocation20_spill] sm:$0xff] }
 0x21f   : > { %v1557_v54 = vadd.f32 %v1556_v48, %v1555_v29  ;;  %3223 = vpow2.f32 %v1302_v13  ;;  %v1091_v6 = vrot.slane %v1090_v43, 1  ;;  %v1103_v35 = vsel %vm831_vm0, %v4316_v38, -inf }
 0x220   : > { %v1531_v9 = vrot.slane %v4552_v20, 4  ;;  %v1116_v56 = vrot.slane %v1115_v60, 2  ;;  %v1454_v17 = vrot.slane %v1453_v26, 1  ;;  %v1104_v10 = vmax.f32 %v1102_v39, %v1103_v35  ;;  %v3214_v42 = vpop.eup %3213 }
 0x221   : > { %v1558_v14 = vrot.slane %v1557_v54, 4  ;;  %v1092_v55 = vmax.f32 %v1090_v43, %v1091_v6  ;;  %v1461_v37 = vrot.slane %v4381_v12, 2  ;;  %v1470_v59 = vrot.slane %v4373_v62, 2 }
 0x222   : > { %v4596_v16 = vmul.f32 %v3214_v42, %v5207_v61  ;;  %v4599_v33 = vmul.f32 %v3214_v42, %v5209_v57  ;;  %v1117_v47 = vmax.f32 %v1115_v60, %v1116_v56  ;;  %v1455_v31 = vadd.f32 %v1454_v17, %v1453_v26 }
 0x223   : > { %v1176_v27 = vsub.f32 %v5197_v28, %v1092_v55  ;;  %v1177_v29 = vsub.f32 %v4277_v5, %v1092_v55  ;;  %v1105_v39 = vrot.slane %v1104_v10, 4  ;;  %v1479_v13 = vrot.slane %v4434_v41, 2 }
 0x224   : > { %5208 = vst [vmem:[#allocation19_spill] sm:$0xff] %v4596_v16  ;;  %5210 = vst [vmem:[#allocation18_spill] sm:$0xff] %v4599_v33  ;;  %v4604_v43 = vpop.eup %3215  ;;  %v1777_v48 = vsel %vm831_vm0, %v4596_v16, 0.0  ;;  %v1774_v6 = vsel %vm831_vm0, %v4599_v33, 0.0  ;;  %v1118_v35 = vrot.slane %v1117_v47, 1  ;;  %3225 = vrcp.f32 %v1455_v31 }
 0x225   : > { %v4610_v42 = vpop.eup %3217  ;;  %v1546_v28 = vsel %vm831_vm0, %v4604_v43, 0.0  ;;  %1778 = vadd.xlane.f32.xlu1 %v1777_v48  ;;  %1775 = vadd.xlane.f32.xlu0 %v1774_v6  ;;  %v1296_v5 = vmul.f32 1.442695, %v1176_v27  ;;  %v1298_v60 = vmul.f32 1.442695, %v1177_v29  ;;  %v1106_v26 = vmax.f32 %v1104_v10, %v1105_v39  ;;  %v5211_v27 = vld [vmem:[#allocation31_spill] sm:$0xff] }
 0x226   : > { %v1547_v56 = vsel %vm831_vm0, %v4610_v42, 0.0  ;;  %v1119_v17 = vmax.f32 %v1117_v47, %v1118_v35  ;;  %v1462_v55 = vadd.f32 %v1461_v37, %v4381_v12  ;;  %v1471_v61 = vadd.f32 %v1470_v59, %v4373_v62  ;;  %v5212_v29 = vld [vmem:[#allocation30_spill] sm:$0xff] }
 0x227   : > { %v3220_v57 = vpop.eup %3219  ;;  %v4618_v31 = vadd.f32 %v1547_v56, %v1546_v28  ;;  %3227 = vpow2.f32 %v1296_v5  ;;  %v1107_v33 = vrot.slane %v1106_v26, 2  ;;  %v1480_v16 = vadd.f32 %v1479_v13, %v4434_v41 }
 0x228   : > { %v4621_v48 = vpop.eup %3221  ;;  %3229 = vpow2.f32 %v1298_v60  ;;  %v4624_v10 = vmul.f32 %v3220_v57, %v5211_v27  ;;  %v4627_v39 = vmul.f32 %v3220_v57, %v5212_v29  ;;  %v1182_v12 = vsub.f32 %v4297_v2, %v1119_v17 }
 0x229   : > { %v4630_v37 = vpop.eup %3223  ;;  %v4633_v62 = vadd.f32 %v1531_v9, %v4552_v20  ;;  %v1573_v59 = vsel %vm831_vm0, %v4621_v48, 0.0  ;;  %v1183_v41 = vsub.f32 %v4309_v18, %v1119_v17  ;;  %v1108_v47 = vmax.f32 %v1106_v26, %v1107_v33 }
 0x22a   : > { %v1574_v13 = vsel %vm831_vm0, %v4630_v37, 0.0  ;;  %v1783_v6 = vsel %vm831_vm0, %v4624_v10, 0.0  ;;  %v1780_v2 = vsel %vm831_vm0, %v4627_v39, 0.0  ;;  %v1308_v35 = vmul.f32 1.442695, %v1182_v12 }
 0x22b   : > { %v4644_v28 = vadd.f32 %v1558_v14, %v1557_v54  ;;  %v1575_v20 = vadd.f32 %v1574_v13, %v1573_v59  ;;  %1784 = vadd.xlane.f32.xlu1 %v1783_v6  ;;  %1781 = vadd.xlane.f32.xlu0 %v1780_v2  ;;  %v1310_v9 = vmul.f32 1.442695, %v1183_v41  ;;  %v1109_v5 = vrot.slane %v1108_v47, 1  ;;  %v5213_v59 = vld [vmem:[#allocation29_spill] sm:$0xff]  ;;  %v5214_v13 = vld [vmem:[#allocation28_spill] sm:$0xff] }
 0x22c   : > { %3231 = vpow2.f32 %v1308_v35  ;;  %v1463_v18 = vrot.slane %v1462_v55, 1  ;;  %v1472_v33 = vrot.slane %v1471_v61, 1  ;;  %v1481_v60 = vrot.slane %v1480_v16, 1 }
 0x22d   : > { %v1549_v26 = vrot.slane %v4618_v31, 4  ;;  %3233 = vpow2.f32 %v1310_v9  ;;  %v1110_v56 = vmax.f32 %v1108_v47, %v1109_v5  ;;  %v1488_v17 = vrot.slane %v4383_v15, 2 }
 0x22e   : > { %v3226_v57 = vpop.eup %3225  ;;  %v1464_v27 = vadd.f32 %v1463_v18, %v1462_v55  ;;  %v1473_v29 = vadd.f32 %v1472_v33, %v1471_v61  ;;  %v1482_v54 = vadd.f32 %v1481_v60, %v1480_v16  ;;  %v1497_v14 = vrot.slane %v4501_v4, 2 }
 0x22f   : > { %v1576_v12 = vrot.slane %v1575_v20, 4  ;;  %v4650_v41 = vmul.f32 %v3226_v57, %v5213_v59  ;;  %v4653_v6 = vmul.f32 %v3226_v57, %v5214_v13  ;;  %v1180_v2 = vsub.f32 %v4307_v3, %v1110_v56 }
 0x230   : > { %v1181_v35 = vsub.f32 %v4316_v38, %v1110_v56  ;;  %3235 = vrcp.f32 %v1464_v27  ;;  %v1489_v47 = vadd.f32 %v1488_v17, %v4383_v15  ;;  %v1498_v55 = vadd.f32 %v1497_v14, %v4501_v4 }
 0x231   : > { %v4659_v61 = vpop.eup %3227  ;;  %v1789_v16 = vsel %vm831_vm0, %v4650_v41, 0.0  ;;  %v1786_v9 = vsel %vm831_vm0, %v4653_v6, 0.0  ;;  %v1304_v5 = vmul.f32 1.442695, %v1180_v2  ;;  %3237 = vrcp.f32 %v1473_v29 }
 0x232   : > { %v4665_v18 = vpop.eup %3229  ;;  %v1564_v3 = vsel %vm831_vm0, %v4659_v61, 0.0  ;;  %1790 = vadd.xlane.f32.xlu1 %v1789_v16  ;;  %1787 = vadd.xlane.f32.xlu0 %v1786_v9  ;;  %v1306_v38 = vmul.f32 1.442695, %v1181_v35  ;;  %3239 = vrcp.f32 %v1482_v54  ;;  %v1490_v15 = vrot.slane %v1489_v47, 1 }
 0x233   : > { %v1565_v4 = vsel %vm831_vm0, %v4665_v18, 0.0  ;;  %3241 = vpow2.f32 %v1304_v5  ;;  %v1499_v33 = vrot.slane %v1498_v55, 1  ;;  %v1506_v60 = vrot.slane %v4441_v24, 2 }
 0x234   : > { %v1566_v56 = vadd.f32 %v1565_v4, %v1564_v3  ;;  %3243 = vpow2.f32 %v1306_v38  ;;  %v1491_v17 = vadd.f32 %v1490_v15, %v1489_v47  ;;  %v1515_v57 = vrot.slane %v4554_v23, 2 }
 0x235   : > { %v1500_v27 = vadd.f32 %v1499_v33, %v1498_v55  ;;  %v1507_v29 = vadd.f32 %v1506_v60, %v4441_v24  ;;  %v1524_v14 = vrot.slane %v4511_v0, 2  ;;  %v1533_v54 = vrot.slane %v4633_v62, 2 }
 0x236   : > { %v4676_v59 = vpop.eup %3231  ;;  %v1550_v13 = vadd.f32 %v1549_v26, %v4618_v31  ;;  %3245 = vrcp.f32 %v1491_v17  ;;  %v1516_v2 = vadd.f32 %v1515_v57, %v4554_v23  ;;  %v1542_v35 = vrot.slane %v4556_v1, 2 }
 0x237   : > { %v4681_v16 = vpop.eup %3233  ;;  %v1591_v47 = vsel %vm831_vm0, %v4676_v59, 0.0  ;;  %3247 = vrcp.f32 %v1500_v27  ;;  %v1508_v24 = vrot.slane %v1507_v29, 1  ;;  %v1525_v55 = vadd.f32 %v1524_v14, %v4511_v0  ;;  %v5215_v14 = vld [vmem:[#allocation39_spill] sm:$0xff] }
 0x238   : > { %v4686_v9 = vadd.f32 %v1576_v12, %v1575_v20  ;;  %v1592_v5 = vsel %vm831_vm0, %v4681_v16, 0.0  ;;  %v1517_v31 = vrot.slane %v1516_v2, 1  ;;  %v1534_v26 = vadd.f32 %v1533_v54, %v4633_v62 }
 0x239   : > { %v1567_v23 = vrot.slane %v1566_v56, 4  ;;  %v1593_v3 = vadd.f32 %v1592_v5, %v1591_v47  ;;  %v1509_v38 = vadd.f32 %v1508_v24, %v1507_v29  ;;  %v1526_v15 = vrot.slane %v1525_v55, 1  ;;  %v5216_v29 = vld [vmem:[#allocation37_spill] sm:$0xff] }
 0x23a   : > { %v3236_v4 = vpop.eup %3235  ;;  %v1518_v33 = vadd.f32 %v1517_v31, %v1516_v2  ;;  %v1535_v60 = vrot.slane %v1534_v26, 1  ;;  %v1543_v17 = vadd.f32 %v1542_v35, %v4556_v1  ;;  %v1551_v57 = vrot.slane %v1550_v13, 2 }
 0x23b   : > { %v3238_v27 = vpop.eup %3237  ;;  %v1594_v0 = vrot.slane %v1593_v3, 4  ;;  %v4693_v20 = vmul.f32 %v3236_v4, %v4288_v22  ;;  %v4696_v12 = vmul.f32 %v3236_v4, %v4284_v25  ;;  %3249 = vrcp.f32 %v1509_v38 }
 0x23c   : > { %v3240_v62 = vpop.eup %3239  ;;  %v4699_v54 = vmul.f32 %v3238_v27, %v5215_v14  ;;  %v4702_v47 = vmul.f32 %v3238_v27, %v5216_v29  ;;  %3251 = vrcp.f32 %v1518_v33  ;;  %v1527_v2 = vadd.f32 %v1526_v15, %v1525_v55 }
 0x23d   : > { %v4704_v1 = vpop.eup %3241  ;;  %v1795_v35 = vsel %vm831_vm0, %v4693_v20, 0.0  ;;  %v1792_v22 = vsel %vm831_vm0, %v4696_v12, 0.0  ;;  %v4711_v25 = vmul.f32 %v3240_v62, %v4360_v11  ;;  %v1560_v24 = vrot.slane %v4644_v28, 2 }
 0x23e   : > { %v4714_v5 = vpop.eup %3243  ;;  %v1568_v31 = vadd.f32 %v1567_v23, %v1566_v56  ;;  %v1595_v38 = vadd.f32 %v1594_v0, %v1593_v3  ;;  %v1582_v55 = vsel %vm831_vm0, %v4704_v1, 0.0  ;;  %1796 = vadd.xlane.f32.xlu1 %v1795_v35  ;;  %1793 = vadd.xlane.f32.xlu0 %v1792_v22  ;;  %v4719_v15 = vmul.f32 %v3240_v62, %v4352_v36 }
 0x23f   : > { %v1583_v4 = vsel %vm831_vm0, %v4714_v5, 0.0  ;;  %v1801_v11 = vsel %vm831_vm0, %v4699_v54, 0.0  ;;  %3253 = vrcp.f32 %v1527_v2  ;;  %v1536_v33 = vadd.f32 %v1535_v60, %v1534_v26 }
 0x240   : > { %v3246_v27 = vpop.eup %3245  ;;  %v1584_v14 = vadd.f32 %v1583_v4, %v1582_v55  ;;  %v1798_v56 = vsel %vm831_vm0, %v4702_v47, 0.0  ;;  %v1544_v23 = vrot.slane %v1543_v17, 1  ;;  %v1552_v3 = vadd.f32 %v1551_v57, %v1550_v13 }
 0x241   : > { %v3248_v0 = vpop.eup %3247  ;;  %v4728_v29 = vmul.f32 %v3246_v27, %v4342_v30  ;;  %v4731_v36 = vmul.f32 %v3246_v27, %v4335_v58  ;;  %3255 = vrcp.f32 %v1536_v33  ;;  %v1561_v62 = vadd.f32 %v1560_v24, %v4644_v28 }
 0x242   : > { %v1585_v35 = vrot.slane %v1584_v14, 4  ;;  %1802 = vadd.xlane.f32.xlu1 %v1801_v11  ;;  %1799 = vadd.xlane.f32.xlu0 %v1798_v56  ;;  %v4735_v26 = vmul.f32 %v3248_v0, %v4417_v8  ;;  %v4738_v60 = vmul.f32 %v3248_v0, %v4415_v44  ;;  %v1545_v13 = vadd.f32 %v1544_v23, %v1543_v17 }
 0x243   : > { %v1807_v30 = vsel %vm831_vm0, %v4711_v25, 0.0  ;;  %v1804_v58 = vsel %vm831_vm0, %v4719_v15, 0.0  ;;  %v1553_v57 = vrot.slane %v1552_v3, 1  ;;  %v1562_v2 = vrot.slane %v1561_v62, 1 }
 0x244   : > { %v1586_v22 = vadd.f32 %v1585_v35, %v1584_v14  ;;  %3257 = vrcp.f32 %v1545_v13  ;;  %v1569_v4 = vrot.slane %v1568_v31, 2  ;;  %v1578_v8 = vrot.slane %v4686_v9, 2 }
 0x245   : > { %v3250_v28 = vpop.eup %3249  ;;  %v1554_v24 = vadd.f32 %v1553_v57, %v1552_v3  ;;  %v1563_v55 = vadd.f32 %v1562_v2, %v1561_v62  ;;  %v1596_v27 = vrot.slane %v1595_v38, 2 }
 0x246   : > { %v3252_v11 = vpop.eup %3251  ;;  %v1587_v44 = vrot.slane %v1586_v22, 2  ;;  %1808 = vadd.xlane.f32.xlu1 %v1807_v30  ;;  %1805 = vadd.xlane.f32.xlu0 %v1804_v58  ;;  %v4746_v17 = vmul.f32 %v3250_v28, %v4394_v51  ;;  %v4749_v33 = vmul.f32 %v3250_v28, %v4389_v45  ;;  %v1570_v23 = vadd.f32 %v1569_v4, %v1568_v31  ;;  %v5217_v4 = vld [vmem:[#allocation33_spill] sm:$0xff] }
 0x247   : > { %v4752_v14 = vmul.f32 %v3252_v11, %v4489_v53  ;;  %v4755_v56 = vmul.f32 %v3252_v11, %v4487_v49  ;;  %3259 = vrcp.f32 %v1554_v24  ;;  %v1579_v3 = vadd.f32 %v1578_v8, %v4686_v9 }
 0x248   : > { %3261 = vrcp.f32 %v1563_v55  ;;  %v1813_v51 = vsel %vm831_vm0, %v4728_v29, 0.0  ;;  %v1810_v45 = vsel %vm831_vm0, %v4731_v36, 0.0  ;;  %v1571_v62 = vrot.slane %v1570_v23, 1 }
 0x249   : > { %v3254_v0 = vpop.eup %3253  ;;  %v1588_v35 = vadd.f32 %v1587_v44, %v1586_v22  ;;  %v1580_v31 = vrot.slane %v1579_v3, 1  ;;  %v1597_v13 = vadd.f32 %v1596_v27, %v1595_v38  ;;  %v1819_v30 = vsel %vm831_vm0, %v4735_v26, 0.0 }
 0x24a   : > { %1814 = vadd.xlane.f32.xlu1 %v1813_v51  ;;  %1811 = vadd.xlane.f32.xlu0 %v1810_v45  ;;  %v4763_v53 = vmul.f32 %v3254_v0, %v4454_v46  ;;  %v4766_v49 = vmul.f32 %v3254_v0, %v4449_v40  ;;  %v1816_v58 = vsel %vm831_vm0, %v4738_v60, 0.0  ;;  %v1572_v57 = vadd.f32 %v1571_v62, %v1570_v23 }
 0x24b   : > { %v3256_v9 = vpop.eup %3255  ;;  %v1589_v2 = vrot.slane %v1588_v35, 1  ;;  %v1581_v40 = vadd.f32 %v1580_v31, %v1579_v3  ;;  %v1598_v24 = vrot.slane %v1597_v13, 1  ;;  %v1822_v44 = vsel %vm831_vm0, %v4749_v33, 0.0 }
 0x24c   : > { %v4773_v22 = vmul.f32 %v3256_v9, %v4542_v19  ;;  %v4776_v46 = vmul.f32 %v3256_v9, %v4534_v21  ;;  %3263 = vrcp.f32 %v1572_v57  ;;  %v1825_v21 = vsel %vm831_vm0, %v4746_v17, 0.0 }
 0x24d   : > { %v1590_v28 = vadd.f32 %v1589_v2, %v1588_v35  ;;  %3265 = vrcp.f32 %v1581_v40  ;;  %v1599_v11 = vadd.f32 %v1598_v24, %v1597_v13  ;;  %v1831_v0 = vsel %vm831_vm0, %v4752_v14, 0.0 }
 0x24e   : > { %v3258_v38 = vpop.eup %3257  ;;  %1820 = vadd.xlane.f32.xlu1 %v1819_v30  ;;  %1817 = vadd.xlane.f32.xlu0 %v1816_v58  ;;  %v1828_v51 = vsel %vm831_vm0, %v4755_v56, 0.0  ;;  %v1834_v30 = vsel %vm831_vm0, %v4766_v49, 0.0  ;;  %v1843_v2 = vsel %vm831_vm0, %v4773_v22, 0.0  ;;  %v1840_v40 = vsel %vm831_vm0, %v4776_v46, 0.0 }
 0x24f   : > { %v4779_v55 = vmul.f32 %v3258_v38, %v4509_v50  ;;  %v4782_v8 = vmul.f32 %v3258_v38, %v5217_v4  ;;  %3267 = vrcp.f32 %v1590_v28  ;;  %v1704_v27 = vpop.xlane.xlu1 %1703 }
 0x250   : > { %3269 = vrcp.f32 %v1599_v11 }
 0x251   : > { %v3260_v19 = vpop.eup %3259 }
 0x252   : > { %v3262_v23 = vpop.eup %3261  ;;  %1826 = vadd.xlane.f32.xlu1 %v1825_v21  ;;  %1823 = vadd.xlane.f32.xlu0 %v1822_v44  ;;  %v4789_v50 = vmul.f32 %v3260_v19, %v4610_v42  ;;  %v4792_v3 = vmul.f32 %v3260_v19, %v4604_v43  ;;  %v1698_v35 = vpop.xlane.xlu0 %1697  ;;  %v1849_v21 = vsel %vm831_vm0, %v4779_v55, 0.0 }
 0x253   : > { %v4799_v45 = vmul.f32 %v3262_v23, %v4583_v7  ;;  %v4802_v62 = vmul.f32 %v3262_v23, %v4577_v52  ;;  %v1707_v31 = vpop.xlane.xlu1 %1706  ;;  %v1837_v52 = vsel %vm831_vm0, %v4763_v53, 0.0 }
 0x254   : > { %3271 = vrcp.f32 %v1707_v31  ;;  %v1852_v44 = vsel %vm831_vm0, %v4792_v3, 0.0 }
 0x255   : > { %3273 = vrcp.f32 %v1698_v35  ;;  %v5220_v35 = vld [vmem:[#allocation27_spill] sm:$0xff] }
 0x256   : > { %1832 = vadd.xlane.f32.xlu1 %v1831_v0  ;;  %1829 = vadd.xlane.f32.xlu0 %v1828_v51  ;;  %v3264_v42 = vpop.eup %3263  ;;  %3275 = vrcp.f32 %v1704_v27  ;;  %v1701_v9 = vpop.xlane.xlu0 %1700  ;;  %v5218_v27 = vld [vmem:[#allocation25_spill] sm:$0xff]  ;;  %v5219_v0 = vld [vmem:[#allocation26_spill] sm:$0xff] }
 0x257   : > { %v4805_v43 = vmul.f32 %v3264_v42, %v4665_v18  ;;  %v4808_v13 = vmul.f32 %v3264_v42, %v4659_v61  ;;  %v3266_v7 = vpop.eup %3265  ;;  %3277 = vrcp.f32 %v1701_v9  ;;  %v5221_v42 = vld [vmem:[#allocation24_spill] sm:$0xff] }
 0x258   : > { %v4815_v57 = vmul.f32 %v3266_v7, %v4630_v37  ;;  %v4818_v18 = vmul.f32 %v3266_v7, %v4621_v48 }
 0x259   : > { %v3268_v58 = vpop.eup %3267 }
 0x25a   : > { %1838 = vadd.xlane.f32.xlu1 %v1837_v52  ;;  %1835 = vadd.xlane.f32.xlu0 %v1834_v30  ;;  %v3270_v61 = vpop.eup %3269  ;;  %v4825_v28 = vmul.f32 %v3268_v58, %v4714_v5  ;;  %v4828_v24 = vmul.f32 %v3268_v58, %v4704_v1  ;;  %v1846_v5 = vsel %vm831_vm0, %v4782_v8, 0.0  ;;  %v1861_v30 = vsel %vm831_vm0, %v4799_v45, 0.0 }
 0x25b   : > { %v4831_v38 = vmul.f32 %v3270_v61, %v4681_v16  ;;  %v4834_v37 = vmul.f32 %v3270_v61, %v4676_v59  ;;  %v1855_v59 = vsel %vm831_vm0, %v4789_v50, 0.0  ;;  %v1858_v58 = vsel %vm831_vm0, %v4802_v62, 0.0 }
 0x25e   : > { %1844 = vadd.xlane.f32.xlu1 %v1843_v2  ;;  %1841 = vadd.xlane.f32.xlu0 %v1840_v40  ;;  %v3272_v48 = vpop.eup %3271  ;;  %v1867_v2 = vsel %vm831_vm0, %v4805_v43, 0.0  ;;  %v1864_v40 = vsel %vm831_vm0, %v4808_v13, 0.0 }
 0x25f   : > { %v1713_v4 = vpop.xlane.xlu1 %1712  ;;  %v1710_v11 = vpop.xlane.xlu0 %1709  ;;  %v1955_v23 = vmul.f32 %v3272_v48, %v5218_v27 }
 0x260   : > { %v3274_v19 = vpop.eup %3273  ;;  %3279 = vrcp.f32 %v1713_v4 }
 0x261   : > { %v3276_v1 = vpop.eup %3275  ;;  %3281 = vrcp.f32 %v1710_v11  ;;  %v1952_v51 = vmul.f32 %v3274_v19, %v5219_v0  ;;  %v5222_v19 = vld [vmem:[#allocation34_spill] sm:$0xff]  ;;  %v1879_v0 = vsel %vm831_vm0, %v4825_v28, 0.0 }
 0x262   : > { %1850 = vadd.xlane.f32.xlu1 %v1849_v21  ;;  %1847 = vadd.xlane.f32.xlu0 %v1846_v5  ;;  %v3278_v16 = vpop.eup %3277  ;;  %v1954_v9 = vmul.f32 %v3276_v1, %v5221_v42  ;;  %v5223_v5 = vld [vmem:[#allocation35_spill] sm:$0xff] }
 0x263   : > { %v1953_v31 = vmul.f32 %v3278_v16, %v5220_v35 }
 0x264   : > { %v2017_v52 = vpack.c.bf16 %v1955_v23, %v1954_v9 }
 0x265   : > { %v2016_v7 = vpack.c.bf16 %v1953_v31, %v1952_v51  ;;  %v1876_v51 = vsel %vm831_vm0, %v4828_v24, 0.0 }
 0x266   : > { %1856 = vadd.xlane.f32.xlu1 %v1855_v59  ;;  %1853 = vadd.xlane.f32.xlu0 %v1852_v44  ;;  %v1873_v59 = vsel %vm831_vm0, %v4815_v57, 0.0  ;;  %v1870_v44 = vsel %vm831_vm0, %v4818_v18, 0.0 }
 0x267   : > { %2900 = vmatprep.mubr.msk.bf16.mxu1 %vm831_vm0, %v2016_v7  ;;  %v5224_v7 = vld [vmem:[#allocation40_spill] sm:$0xff] }
 0x268   : > { %2901 = vmatmul.mubr.msk.bf16.vlgmr.msra.gmra.mrb[0].mxu1 %vm831_vm0, %v2017_v52 }
 0x26a   : > { %1862 = vadd.xlane.f32.xlu1 %v1861_v30  ;;  %1859 = vadd.xlane.f32.xlu0 %v1858_v58  ;;  %v3280_v61 = vpop.eup %3279  ;;  %v1719_v48 = vpop.xlane.xlu1 %1718  ;;  %v5225_v30 = vld [vmem:[#allocation41_spill] sm:$0xff] }
 0x26b   : > { %v1716_v4 = vpop.xlane.xlu0 %1715  ;;  %v3282_v11 = vpop.eup %3281  ;;  %3283 = vrcp.f32 %v1719_v48  ;;  %v1957_v21 = vmul.f32 %v3280_v61, %v5222_v19  ;;  %v1885_v61 = vsel %vm831_vm0, %v4831_v38, 0.0 }
 0x26c   : > { %3285 = vrcp.f32 %v1716_v4  ;;  %v1956_v1 = vmul.f32 %v3282_v11, %v5223_v5  ;;  %v5226_v11 = vld [vmem:[#allocation42_spill] sm:$0xff] }
 0x26e   : > { %1868 = vadd.xlane.f32.xlu1 %v1867_v2  ;;  %1865 = vadd.xlane.f32.xlu0 %v1864_v40  ;;  %v2018_v16 = vpack.c.bf16 %v1957_v21, %v1956_v1  ;;  %v1882_v2 = vsel %vm831_vm0, %v4834_v37, 0.0  ;;  %v5227_v21 = vld [vmem:[#allocation43_spill] sm:$0xff] }
 0x270   : > { %2904 = vmatprep.mubr.msk.bf16.mxu1 %vm831_vm0, %v2018_v16 }
 0x271   : > { %v1725_v27 = vpop.xlane.xlu1 %1724  ;;  %v1722_v23 = vpop.xlane.xlu0 %1721 }
 0x272   : > { %1874 = vadd.xlane.f32.xlu1 %v1873_v59  ;;  %1871 = vadd.xlane.f32.xlu0 %v1870_v44  ;;  %3287 = vrcp.f32 %v1725_v27 }
 0x273   : > { %3289 = vrcp.f32 %v1722_v23  ;;  %v5228_v23 = vld [vmem:[#allocation44_spill] sm:$0xff] }
 0x275   : > { %v3284_v35 = vpop.eup %3283 }
 0x276   : > { %1880 = vadd.xlane.f32.xlu1 %v1879_v0  ;;  %1877 = vadd.xlane.f32.xlu0 %v1876_v51  ;;  %v3286_v31 = vpop.eup %3285  ;;  %v1731_v42 = vpop.xlane.xlu1 %1730  ;;  %v1959_v52 = vmul.f32 %v3284_v35, %v5224_v7  ;;  %v5229_v51 = vld [vmem:[#allocation45_spill] sm:$0xff] }
 0x277   : > { %v1728_v9 = vpop.xlane.xlu0 %1727  ;;  %3291 = vrcp.f32 %v1731_v42  ;;  %v1958_v58 = vmul.f32 %v3286_v31, %v5225_v30  ;;  %v5230_v30 = vld [vmem:[#allocation46_spill] sm:$0xff] }
 0x278   : > { %3293 = vrcp.f32 %v1728_v9 }
 0x279   : > { %v2019_v40 = vpack.c.bf16 %v1959_v52, %v1958_v58 }
 0x27a   : > { %1886 = vadd.xlane.f32.xlu1 %v1885_v61  ;;  %1883 = vadd.xlane.f32.xlu0 %v1882_v2  ;;  %v5231_v61 = vld [vmem:[#allocation47_spill] sm:$0xff] }
 0x27b   : > { %2905 = vmatmul.mubr.msk.bf16.gmra.mrb[4].mxu1 %vm831_vm0, %v2019_v40 }
 0x27c   : > { %v3288_v48 = vpop.eup %3287 }
 0x27d   : > { %v3290_v4 = vpop.eup %3289  ;;  %v1961_v19 = vmul.f32 %v3288_v48, %v5226_v11 }
 0x27e   : > { %v1960_v5 = vmul.f32 %v3290_v4, %v5227_v21  ;;  %v5232_v21 = vld [vmem:[#allocation48_spill] sm:$0xff] }
 0x280   : > { %v2020_v1 = vpack.c.bf16 %v1961_v19, %v1960_v5 }
 0x281   : > { %v1737_v16 = vpop.xlane.xlu1 %1736  ;;  %v1734_v59 = vpop.xlane.xlu0 %1733 }
 0x282   : > { %v3292_v44 = vpop.eup %3291  ;;  %3295 = vrcp.f32 %v1737_v16  ;;  %2908 = vmatprep.mubr.msk.bf16.mxu1 %vm831_vm0, %v2020_v1 }
 0x283   : > { %v3294_v27 = vpop.eup %3293  ;;  %3297 = vrcp.f32 %v1734_v59  ;;  %v1963_v0 = vmul.f32 %v3292_v44, %v5228_v23  ;;  %v5233_v59 = vld [vmem:[#allocation49_spill] sm:$0xff] }
 0x284   : > { %v1962_v35 = vmul.f32 %v3294_v27, %v5229_v51  ;;  %v5234_v51 = vld [vmem:[#allocation15_spill] sm:$0xff] }
 0x286   : > { %v2021_v31 = vpack.c.bf16 %v1963_v0, %v1962_v35 }
 0x287   : > { %v1743_v42 = vpop.xlane.xlu1 %1742  ;;  %v1740_v9 = vpop.xlane.xlu0 %1739 }
 0x288   : > { %3299 = vrcp.f32 %v1743_v42  ;;  %2909 = vmatmul.mubr.msk.bf16.gmra.mrb[8].mxu1 %vm831_vm0, %v2021_v31  ;;  %v5235_v31 = vld [vmem:[#allocation14_spill] sm:$0xff] }
 0x289   : > { %3301 = vrcp.f32 %v1740_v9 }
 0x28c   : > { %v3296_v7 = vpop.eup %3295 }
 0x28d   : > { %v3298_v52 = vpop.eup %3297  ;;  %v1965_v58 = vmul.f32 %v3296_v7, %v5230_v30 }
 0x28e   : > { %v1964_v2 = vmul.f32 %v3298_v52, %v5231_v61  ;;  %v5236_v61 = vld [vmem:[#allocation13_spill] sm:$0xff] }
 0x290   : > { %v1749_v40 = vpop.xlane.xlu1 %1748  ;;  %v1746_v48 = vpop.xlane.xlu0 %1745  ;;  %v2022_v4 = vpack.c.bf16 %v1965_v58, %v1964_v2 }
 0x291   : > { %3303 = vrcp.f32 %v1749_v40  ;;  %v5237_v40 = vld [vmem:[#allocation12_spill] sm:$0xff] }
 0x292   : > { %v3300_v11 = vpop.eup %3299  ;;  %3305 = vrcp.f32 %v1746_v48  ;;  %2912 = vmatprep.mubr.msk.bf16.mxu1 %vm831_vm0, %v2022_v4 }
 0x293   : > { %v3302_v19 = vpop.eup %3301  ;;  %v1967_v5 = vmul.f32 %v3300_v11, %v5232_v21 }
 0x294   : > { %v1755_v1 = vpop.xlane.xlu1 %1754  ;;  %v1752_v16 = vpop.xlane.xlu0 %1751  ;;  %v1966_v44 = vmul.f32 %v3302_v19, %v5233_v59  ;;  %v5238_v59 = vld [vmem:[#allocation36_spill] sm:$0xff] }
 0x295   : > { %3307 = vrcp.f32 %v1755_v1 }
 0x296   : > { %3309 = vrcp.f32 %v1752_v16  ;;  %v2023_v27 = vpack.c.bf16 %v1967_v5, %v1966_v44 }
 0x298   : > { %2913 = vmatmul.mubr.msk.bf16.gmra.mrb[12].mxu1 %vm831_vm0, %v2023_v27  ;;  %v5239_v27 = vld [vmem:[#allocation32_spill] sm:$0xff] }
 0x29b   : > { %v3304_v23 = vpop.eup %3303 }
 0x29c   : > { %v3306_v0 = vpop.eup %3305  ;;  %v1969_v35 = vmul.f32 %v3304_v23, %v5234_v51 }
 0x29d   : > { %v1968_v42 = vmul.f32 %v3306_v0, %v5235_v31  ;;  %v1761_v9 = vpop.xlane.xlu1 %1760  ;;  %v5240_v31 = vld [vmem:[#allocation38_spill] sm:$0xff] }
 0x29e   : > { %v1758_v7 = vpop.xlane.xlu0 %1757  ;;  %3311 = vrcp.f32 %v1761_v9 }
 0x29f   : > { %v3308_v52 = vpop.eup %3307  ;;  %v2024_v30 = vpack.c.bf16 %v1969_v35, %v1968_v42  ;;  %3313 = vrcp.f32 %v1758_v7 }
 0x2a0   : > { %v3310_v58 = vpop.eup %3309  ;;  %v1971_v2 = vmul.f32 %v3308_v52, %v5236_v61 }
 0x2a1   : > { %2916 = vmatprep.mubr.msk.bf16.mxu1 %vm831_vm0, %v2024_v30  ;;  %v1970_v48 = vmul.f32 %v3310_v58, %v5237_v40  ;;  %v1767_v4 = vpop.xlane.xlu1 %1766 }
 0x2a2   : > { %v1764_v11 = vpop.xlane.xlu0 %1763  ;;  %3315 = vrcp.f32 %v1767_v4 }
 0x2a3   : > { %v2025_v19 = vpack.c.bf16 %v1971_v2, %v1970_v48  ;;  %3317 = vrcp.f32 %v1764_v11 }
 0x2a5   : > { %2917 = vmatmul.mubr.msk.bf16.gmra.mrb[16].mxu1 %vm831_vm0, %v2025_v19 }
 0x2a8   : > { %v3312_v21 = vpop.eup %3311 }
 0x2a9   : > { %v3314_v5 = vpop.eup %3313  ;;  %v1973_v44 = vmul.f32 %v3312_v21, %v5238_v59  ;;  %v5241_v21 = vld [vmem:[#allocation19_spill] sm:$0xff]  ;;  %v5242_v59 = vld [vmem:[#allocation18_spill] sm:$0xff] }
 0x2aa   : > { %v1773_v1 = vpop.xlane.xlu1 %1772  ;;  %v1770_v16 = vpop.xlane.xlu0 %1769  ;;  %v1972_v23 = vmul.f32 %v3314_v5, %v5239_v27 }
 0x2ab   : > { %3319 = vrcp.f32 %v1773_v1 }
 0x2ac   : > { %3321 = vrcp.f32 %v1770_v16  ;;  %v3316_v0 = vpop.eup %3315  ;;  %v2026_v51 = vpack.c.bf16 %v1973_v44, %v1972_v23 }
 0x2ad   : > { %v3318_v35 = vpop.eup %3317  ;;  %v1975_v42 = vmul.f32 %v3316_v0, %v5240_v31 }
 0x2ae   : > { %2920 = vmatprep.mubr.msk.bf16.mxu1 %vm831_vm0, %v2026_v51  ;;  %v1974_v9 = vmul.f32 %v3318_v35, %v4540_v32 }
 0x2b0   : > { %v2027_v7 = vpack.c.bf16 %v1975_v42, %v1974_v9 }
 0x2b2   : > { %v1779_v52 = vpop.xlane.xlu1 %1778  ;;  %v1776_v30 = vpop.xlane.xlu0 %1775  ;;  %2921 = vmatmul.mubr.msk.bf16.gmra.mrb[20].mxu1 %vm831_vm0, %v2027_v7 }
 0x2b3   : > { %3323 = vrcp.f32 %v1779_v52 }
 0x2b4   : > { %3325 = vrcp.f32 %v1776_v30 }
 0x2b5   : > { %v3320_v58 = vpop.eup %3319 }
 0x2b6   : > { %v3322_v61 = vpop.eup %3321  ;;  %v1977_v2 = vmul.f32 %v3320_v58, %v4570_v34 }
 0x2b7   : > { %v1976_v40 = vmul.f32 %v3322_v61, %v4573_v63 }
 0x2b8   : > { %v1785_v48 = vpop.xlane.xlu1 %1784  ;;  %v1782_v4 = vpop.xlane.xlu0 %1781 }
 0x2b9   : > { %3327 = vrcp.f32 %v1785_v48  ;;  %v2028_v11 = vpack.c.bf16 %v1977_v2, %v1976_v40 }
 0x2ba   : > { %3329 = vrcp.f32 %v1782_v4 }
 0x2bb   : > { %2924 = vmatprep.mubr.msk.bf16.mxu1 %vm831_vm0, %v2028_v11 }
 0x2bd   : > { %v3324_v32 = vpop.eup %3323 }
 0x2be   : > { %v3326_v19 = vpop.eup %3325  ;;  %v1979_v5 = vmul.f32 %v3324_v32, %v5241_v21 }
 0x2bf   : > { %v1791_v1 = vpop.xlane.xlu1 %1790  ;;  %v1788_v16 = vpop.xlane.xlu0 %1787  ;;  %v1978_v44 = vmul.f32 %v3326_v19, %v5242_v59 }
 0x2c0   : > { %3331 = vrcp.f32 %v1791_v1 }
 0x2c1   : > { %3333 = vrcp.f32 %v1788_v16  ;;  %v2029_v34 = vpack.c.bf16 %v1979_v5, %v1978_v44 }
 0x2c3   : > { %v3328_v27 = vpop.eup %3327  ;;  %2925 = vmatmul.mubr.msk.bf16.gmra.mrb[24].mxu1 %vm831_vm0, %v2029_v34 }
 0x2c4   : > { %v3330_v63 = vpop.eup %3329  ;;  %v1981_v23 = vmul.f32 %v3328_v27, %v4624_v10 }
 0x2c5   : > { %v1980_v0 = vmul.f32 %v3330_v63, %v4627_v39 }
 0x2c7   : > { %v2030_v51 = vpack.c.bf16 %v1981_v23, %v1980_v0 }
 0x2c9   : > { %2928 = vmatprep.mubr.msk.bf16.mxu1 %vm831_vm0, %v2030_v51 }
 0x2ca   : > { %v3332_v35 = vpop.eup %3331 }
 0x2cb   : > { %v3334_v31 = vpop.eup %3333  ;;  %v1797_v42 = vpop.xlane.xlu1 %1796  ;;  %v1983_v7 = vmul.f32 %v3332_v35, %v4650_v41 }
 0x2cc   : > { %v1794_v9 = vpop.xlane.xlu0 %1793  ;;  %3335 = vrcp.f32 %v1797_v42  ;;  %v1982_v52 = vmul.f32 %v3334_v31, %v4653_v6 }
 0x2cd   : > { %3337 = vrcp.f32 %v1794_v9 }
 0x2ce   : > { %v2031_v30 = vpack.c.bf16 %v1983_v7, %v1982_v52 }
 0x2cf   : > { %v1803_v58 = vpop.xlane.xlu1 %1802 }
 0x2d0   : > { %v1800_v61 = vpop.xlane.xlu0 %1799  ;;  %3339 = vrcp.f32 %v1803_v58  ;;  %2929 = vmatmul.mubr.msk.bf16.gmra.mrb[28].mxu1 %vm831_vm0, %v2031_v30 }
 0x2d1   : > { %3341 = vrcp.f32 %v1800_v61 }
 0x2d3   : > { %v1809_v10 = vpop.xlane.xlu1 %1808 }
 0x2d4   : > { %v1806_v39 = vpop.xlane.xlu0 %1805  ;;  %3343 = vrcp.f32 %v1809_v10 }
 0x2d5   : > { %3345 = vrcp.f32 %v1806_v39 }
 0x2d6   : > { %v3336_v2 = vpop.eup %3335 }
 0x2d7   : > { %v3338_v40 = vpop.eup %3337  ;;  %v1815_v48 = vpop.xlane.xlu1 %1814  ;;  %v1985_v41 = vmul.f32 %v3336_v2, %v4693_v20 }
 0x2d8   : > { %v1812_v4 = vpop.xlane.xlu0 %1811  ;;  %3347 = vrcp.f32 %v1815_v48  ;;  %v1984_v6 = vmul.f32 %v3338_v40, %v4696_v12 }
 0x2d9   : > { %3349 = vrcp.f32 %v1812_v4 }
 0x2da   : > { %v3340_v11 = vpop.eup %3339  ;;  %v2032_v32 = vpack.c.bf16 %v1985_v41, %v1984_v6 }
 0x2db   : > { %v3342_v19 = vpop.eup %3341  ;;  %v1821_v21 = vpop.xlane.xlu1 %1820  ;;  %v1987_v1 = vmul.f32 %v3340_v11, %v4699_v54 }
 0x2dc   : > { %v1818_v5 = vpop.xlane.xlu0 %1817  ;;  %2932 = vmatprep.mubr.msk.bf16.mxu1 %vm831_vm0, %v2032_v32  ;;  %3351 = vrcp.f32 %v1821_v21  ;;  %v1986_v16 = vmul.f32 %v3342_v19, %v4702_v47 }
 0x2dd   : > { %3353 = vrcp.f32 %v1818_v5 }
 0x2de   : > { %v3344_v59 = vpop.eup %3343  ;;  %v2033_v44 = vpack.c.bf16 %v1987_v1, %v1986_v16 }
 0x2df   : > { %v3346_v20 = vpop.eup %3345  ;;  %v1827_v34 = vpop.xlane.xlu1 %1826  ;;  %v1989_v12 = vmul.f32 %v3344_v59, %v4711_v25 }
 0x2e0   : > { %v1824_v27 = vpop.xlane.xlu0 %1823  ;;  %3355 = vrcp.f32 %v1827_v34  ;;  %2933 = vmatmul.mubr.msk.bf16.gmra.mrb[32].mxu1 %vm831_vm0, %v2033_v44  ;;  %v1988_v63 = vmul.f32 %v3346_v20, %v4719_v15 }
 0x2e1   : > { %3357 = vrcp.f32 %v1824_v27 }
 0x2e2   : > { %v3348_v54 = vpop.eup %3347  ;;  %v2034_v23 = vpack.c.bf16 %v1989_v12, %v1988_v63 }
 0x2e3   : > { %v3350_v0 = vpop.eup %3349  ;;  %v1833_v51 = vpop.xlane.xlu1 %1832  ;;  %v1991_v47 = vmul.f32 %v3348_v54, %v4728_v29 }
 0x2e4   : > { %v1830_v35 = vpop.xlane.xlu0 %1829  ;;  %2936 = vmatprep.mubr.msk.bf16.mxu1 %vm831_vm0, %v2034_v23  ;;  %3359 = vrcp.f32 %v1833_v51  ;;  %v1990_v31 = vmul.f32 %v3350_v0, %v4731_v36 }
 0x2e5   : > { %3361 = vrcp.f32 %v1830_v35 }
 0x2e6   : > { %v3352_v25 = vpop.eup %3351  ;;  %v2035_v42 = vpack.c.bf16 %v1991_v47, %v1990_v31 }
 0x2e7   : > { %v3354_v9 = vpop.eup %3353  ;;  %v1839_v7 = vpop.xlane.xlu1 %1838  ;;  %v1993_v15 = vmul.f32 %v3352_v25, %v4735_v26 }
 0x2e8   : > { %v1836_v52 = vpop.xlane.xlu0 %1835  ;;  %3363 = vrcp.f32 %v1839_v7  ;;  %2937 = vmatmul.mubr.msk.bf16.gmra.mrb[36].mxu1 %vm831_vm0, %v2035_v42  ;;  %v1992_v30 = vmul.f32 %v3354_v9, %v4738_v60 }
 0x2e9   : > { %3365 = vrcp.f32 %v1836_v52 }
 0x2ea   : > { %v3356_v29 = vpop.eup %3355  ;;  %v2036_v58 = vpack.c.bf16 %v1993_v15, %v1992_v30 }
 0x2eb   : > { %v3358_v61 = vpop.eup %3357  ;;  %v1845_v10 = vpop.xlane.xlu1 %1844  ;;  %v1995_v36 = vmul.f32 %v3356_v29, %v4746_v17 }
 0x2ec   : > { %v1842_v39 = vpop.xlane.xlu0 %1841  ;;  %2940 = vmatprep.mubr.msk.bf16.mxu1 %vm831_vm0, %v2036_v58  ;;  %3367 = vrcp.f32 %v1845_v10  ;;  %v1994_v2 = vmul.f32 %v3358_v61, %v4749_v33 }
 0x2ed   : > { %3369 = vrcp.f32 %v1842_v39 }
 0x2ee   : > { %v3360_v26 = vpop.eup %3359  ;;  %v2037_v40 = vpack.c.bf16 %v1995_v36, %v1994_v2 }
 0x2ef   : > { %v3362_v48 = vpop.eup %3361  ;;  %v1851_v4 = vpop.xlane.xlu1 %1850  ;;  %v1997_v60 = vmul.f32 %v3360_v26, %v4752_v14 }
 0x2f0   : > { %v1848_v41 = vpop.xlane.xlu0 %1847  ;;  %3371 = vrcp.f32 %v1851_v4  ;;  %2941 = vmatmul.mubr.msk.bf16.gmra.mrb[40].mxu1 %vm831_vm0, %v2037_v40  ;;  %v1996_v6 = vmul.f32 %v3362_v48, %v4755_v56 }
 0x2f1   : > { %3373 = vrcp.f32 %v1848_v41 }
 0x2f2   : > { %v3364_v17 = vpop.eup %3363  ;;  %v2038_v11 = vpack.c.bf16 %v1997_v60, %v1996_v6 }
 0x2f3   : > { %v3366_v32 = vpop.eup %3365  ;;  %v1857_v19 = vpop.xlane.xlu1 %1856  ;;  %v1999_v33 = vmul.f32 %v3364_v17, %v4763_v53 }
 0x2f4   : > { %v1854_v21 = vpop.xlane.xlu0 %1853  ;;  %2944 = vmatprep.mubr.msk.bf16.mxu1 %vm831_vm0, %v2038_v11  ;;  %3375 = vrcp.f32 %v1857_v19  ;;  %v1998_v5 = vmul.f32 %v3366_v32, %v4766_v49 }
 0x2f5   : > { %3377 = vrcp.f32 %v1854_v21 }
 0x2f6   : > { %v3368_v14 = vpop.eup %3367  ;;  %v2039_v1 = vpack.c.bf16 %v1999_v33, %v1998_v5 }
 0x2f7   : > { %v3370_v16 = vpop.eup %3369  ;;  %v1863_v59 = vpop.xlane.xlu1 %1862  ;;  %v2001_v56 = vmul.f32 %v3368_v14, %v4773_v22 }
 0x2f8   : > { %v1860_v44 = vpop.xlane.xlu0 %1859  ;;  %3379 = vrcp.f32 %v1863_v59  ;;  %2945 = vmatmul.mubr.msk.bf16.gmra.mrb[44].mxu1 %vm831_vm0, %v2039_v1  ;;  %v2000_v20 = vmul.f32 %v3370_v16, %v4776_v46 }
 0x2f9   : > { %3381 = vrcp.f32 %v1860_v44 }
 0x2fa   : > { %v3372_v53 = vpop.eup %3371  ;;  %v2040_v34 = vpack.c.bf16 %v2001_v56, %v2000_v20 }
 0x2fb   : > { %v3374_v27 = vpop.eup %3373  ;;  %v1869_v12 = vpop.xlane.xlu1 %1868  ;;  %v2003_v49 = vmul.f32 %v3372_v53, %v4779_v55 }
 0x2fc   : > { %v1866_v63 = vpop.xlane.xlu0 %1865  ;;  %2948 = vmatprep.mubr.msk.bf16.mxu1 %vm831_vm0, %v2040_v34  ;;  %3383 = vrcp.f32 %v1869_v12  ;;  %v2002_v54 = vmul.f32 %v3374_v27, %v4782_v8 }
 0x2fd   : > { %3385 = vrcp.f32 %v1866_v63 }
 0x2fe   : > { %v3376_v22 = vpop.eup %3375  ;;  %v2041_v23 = vpack.c.bf16 %v2003_v49, %v2002_v54 }
 0x2ff   : > { %v3378_v0 = vpop.eup %3377  ;;  %v1875_v51 = vpop.xlane.xlu1 %1874  ;;  %v2005_v46 = vmul.f32 %v3376_v22, %v4789_v50 }
 0x300   : > { %v1872_v35 = vpop.xlane.xlu0 %1871  ;;  %3387 = vrcp.f32 %v1875_v51  ;;  %2949 = vmatmul.mubr.msk.bf16.gmra.mrb[48].mxu1 %vm831_vm0, %v2041_v23  ;;  %v2004_v47 = vmul.f32 %v3378_v0, %v4792_v3 }
 0x301   : > { %3389 = vrcp.f32 %v1872_v35 }
 0x302   : > { %v3380_v55 = vpop.eup %3379  ;;  %v2042_v31 = vpack.c.bf16 %v2005_v46, %v2004_v47 }
 0x303   : > { %v3382_v25 = vpop.eup %3381  ;;  %v1881_v42 = vpop.xlane.xlu1 %1880  ;;  %v2007_v8 = vmul.f32 %v3380_v55, %v4799_v45 }
 0x304   : > { %v1878_v9 = vpop.xlane.xlu0 %1877  ;;  %2952 = vmatprep.mubr.msk.bf16.mxu1 %vm831_vm0, %v2042_v31  ;;  %3391 = vrcp.f32 %v1881_v42  ;;  %v2006_v7 = vmul.f32 %v3382_v25, %v4802_v62 }
 0x305   : > { %3393 = vrcp.f32 %v1878_v9 }
 0x306   : > { %v3384_v50 = vpop.eup %3383  ;;  %v2043_v52 = vpack.c.bf16 %v2007_v8, %v2006_v7 }
 0x307   : > { %v3386_v15 = vpop.eup %3385  ;;  %v1887_v30 = vpop.xlane.xlu1 %1886  ;;  %v2009_v3 = vmul.f32 %v3384_v50, %v4805_v43 }
 0x308   : > { %v1884_v29 = vpop.xlane.xlu0 %1883  ;;  %3395 = vrcp.f32 %v1887_v30  ;;  %2953 = vmatmul.mubr.msk.bf16.gmra.mrb[52].mxu1 %vm831_vm0, %v2043_v52  ;;  %v2008_v58 = vmul.f32 %v3386_v15, %v4808_v13 }
 0x309   : > { %3397 = vrcp.f32 %v1884_v29 }
 0x30a   : > { %v3388_v45 = vpop.eup %3387  ;;  %v2044_v61 = vpack.c.bf16 %v2009_v3, %v2008_v58 }
 0x30b   : > { %v3390_v10 = vpop.eup %3389  ;;  %v2011_v39 = vmul.f32 %v3388_v45, %v4815_v57 }
 0x30c   : > { %2956 = vmatprep.mubr.msk.bf16.mxu1 %vm831_vm0, %v2044_v61  ;;  %v2010_v62 = vmul.f32 %v3390_v10, %v4818_v18 }
 0x30e   : > { %v3392_v36 = vpop.eup %3391  ;;  %v2045_v2 = vpack.c.bf16 %v2011_v39, %v2010_v62 }
 0x30f   : > { %v3394_v26 = vpop.eup %3393  ;;  %v2013_v43 = vmul.f32 %v3392_v36, %v4825_v28 }
 0x310   : > { %2957 = vmatmul.mubr.msk.bf16.gmra.mrb[56].mxu1 %vm831_vm0, %v2045_v2  ;;  %v2012_v13 = vmul.f32 %v3394_v26, %v4828_v24 }
 0x312   : > { %v3396_v40 = vpop.eup %3395  ;;  %v2046_v48 = vpack.c.bf16 %v2013_v43, %v2012_v13 }
 0x313   : > { %v3398_v4 = vpop.eup %3397  ;;  %v2015_v41 = vmul.f32 %v3396_v40, %v4831_v38 }
 0x314   : > { %2960 = vmatprep.mubr.msk.bf16.mxu1 %vm831_vm0, %v2046_v48  ;;  %v2014_v57 = vmul.f32 %v3398_v4, %v4834_v37 }
 0x316   : > { %v2047_v60 = vpack.c.bf16 %v2015_v41, %v2014_v57 }
 0x318   : > { %2961 = vmatmul.mubr.msk.bf16.gmra.mrb[60].mxu1 %vm831_vm0, %v2047_v60 }
 0x33b   : > { %v2902_v18 = vpop.f32.mrb[0].mxu1 }
 0x33c   : > { %2467 = vst [vmem:[%s4961_s20 + $0x10] sm:$0xff] %v2902_v18  ;;  %v2210_v28 = vpop.f32.mrb[1].mxu1 }
 0x33d   : > { %2465 = vst [vmem:[%s4961_s20] sm:$0xff] %v2210_v28  ;;  %v2903_v24 = vpop.f32.mrb[2].mxu1 }
 0x33e   : > { %2468 = vst [vmem:[%s4961_s20 + $0x18] sm:$0xff] %v2903_v24  ;;  %v2213_v38 = vpop.f32.mrb[3].mxu1 }
 0x33f   : > { %2466 = vst [vmem:[%s4961_s20 + $0x8] sm:$0xff] %v2213_v38 }
 0x34e   : > { %v2906_v37 = vpop.f32.mrb[4].mxu1 }
 0x34f   : > { %2471 = vst [vmem:[%s4961_s20 + $0x30] sm:$0xff] %v2906_v37  ;;  %v2226_v6 = vpop.f32.mrb[5].mxu1 }
 0x350   : > { %2469 = vst [vmem:[%s4961_s20 + $0x20] sm:$0xff] %v2226_v6  ;;  %v2907_v17 = vpop.f32.mrb[6].mxu1 }
 0x351   : > { %2472 = vst [vmem:[%s4961_s20 + $0x38] sm:$0xff] %v2907_v17  ;;  %v2229_v11 = vpop.f32.mrb[7].mxu1 }
 0x352   : > { %2470 = vst [vmem:[%s4961_s20 + $0x28] sm:$0xff] %v2229_v11 }
 0x35b   : > { %v2910_v32 = vpop.f32.mrb[8].mxu1 }
 0x35c   : > { %2475 = vst [vmem:[%s4961_s20 + $0x50] sm:$0xff] %v2910_v32  ;;  %v2242_v19 = vpop.f32.mrb[9].mxu1 }
 0x35d   : > { %2473 = vst [vmem:[%s4961_s20 + $0x40] sm:$0xff] %v2242_v19  ;;  %v2911_v21 = vpop.f32.mrb[10].mxu1 }
 0x35e   : > { %2476 = vst [vmem:[%s4961_s20 + $0x58] sm:$0xff] %v2911_v21  ;;  %v2245_v33 = vpop.f32.mrb[11].mxu1 }
 0x35f   : > { %2474 = vst [vmem:[%s4961_s20 + $0x48] sm:$0xff] %v2245_v33 }
 0x36b   : > { %v2914_v5 = vpop.f32.mrb[12].mxu1 }
 0x36c   : > { %2479 = vst [vmem:[%s4961_s20 + $0x70] sm:$0xff] %v2914_v5  ;;  %v2258_v14 = vpop.f32.mrb[13].mxu1 }
 0x36d   : > { %2477 = vst [vmem:[%s4961_s20 + $0x60] sm:$0xff] %v2258_v14  ;;  %v2915_v1 = vpop.f32.mrb[14].mxu1 }
 0x36e   : > { %2480 = vst [vmem:[%s4961_s20 + $0x78] sm:$0xff] %v2915_v1  ;;  %v2261_v16 = vpop.f32.mrb[15].mxu1 }
 0x36f   : > { %2478 = vst [vmem:[%s4961_s20 + $0x68] sm:$0xff] %v2261_v16 }
 0x378   : > { %v2918_v59 = vpop.f32.mrb[16].mxu1 }
 0x379   : > { %2483 = vst [vmem:[%s4961_s20 + $0x90] sm:$0xff] %v2918_v59  ;;  %v2274_v44 = vpop.f32.mrb[17].mxu1 }
 0x37a   : > { %2481 = vst [vmem:[%s4961_s20 + $0x80] sm:$0xff] %v2274_v44  ;;  %v2919_v56 = vpop.f32.mrb[18].mxu1 }
 0x37b   : > { %2484 = vst [vmem:[%s4961_s20 + $0x98] sm:$0xff] %v2919_v56  ;;  %v2277_v20 = vpop.f32.mrb[19].mxu1 }
 0x37c   : > { %2482 = vst [vmem:[%s4961_s20 + $0x88] sm:$0xff] %v2277_v20 }
 0x385   : > { %v2922_v53 = vpop.f32.mrb[20].mxu1 }
 0x386   : > { %2487 = vst [vmem:[%s4961_s20 + $0xb0] sm:$0xff] %v2922_v53  ;;  %v2290_v34 = vpop.f32.mrb[21].mxu1 }
 0x387   : > { %2485 = vst [vmem:[%s4961_s20 + $0xa0] sm:$0xff] %v2290_v34  ;;  %v2923_v27 = vpop.f32.mrb[22].mxu1 }
 0x388   : > { %2488 = vst [vmem:[%s4961_s20 + $0xb8] sm:$0xff] %v2923_v27  ;;  %v2293_v12 = vpop.f32.mrb[23].mxu1 }
 0x389   : > { %2486 = vst [vmem:[%s4961_s20 + $0xa8] sm:$0xff] %v2293_v12 }
 0x396   : > { %v2926_v63 = vpop.f32.mrb[24].mxu1 }
 0x397   : > { %2491 = vst [vmem:[%s4961_s20 + $0xd0] sm:$0xff] %v2926_v63  ;;  %v2306_v49 = vpop.f32.mrb[25].mxu1 }
 0x398   : > { %2489 = vst [vmem:[%s4961_s20 + $0xc0] sm:$0xff] %v2306_v49  ;;  %v2927_v54 = vpop.f32.mrb[26].mxu1 }
 0x399   : > { %2492 = vst [vmem:[%s4961_s20 + $0xd8] sm:$0xff] %v2927_v54  ;;  %v2309_v22 = vpop.f32.mrb[27].mxu1 }
 0x39a   : > { %2490 = vst [vmem:[%s4961_s20 + $0xc8] sm:$0xff] %v2309_v22 }
 0x3a3   : > { %v2930_v23 = vpop.f32.mrb[28].mxu1 }
 0x3a4   : > { %2495 = vst [vmem:[%s4961_s20 + $0xf0] sm:$0xff] %v2930_v23  ;;  %v2322_v0 = vpop.f32.mrb[29].mxu1 }
 0x3a5   : > { %2493 = vst [vmem:[%s4961_s20 + $0xe0] sm:$0xff] %v2322_v0  ;;  %v2931_v51 = vpop.f32.mrb[30].mxu1 }
 0x3a6   : > { %2496 = vst [vmem:[%s4961_s20 + $0xf8] sm:$0xff] %v2931_v51  ;;  %v2325_v35 = vpop.f32.mrb[31].mxu1 }
 0x3a7   : > { %2494 = vst [vmem:[%s4961_s20 + $0xe8] sm:$0xff] %v2325_v35 }
 0x3b3   : > { %v2934_v46 = vpop.f32.mrb[32].mxu1 }
 0x3b4   : > { %2499 = vst [vmem:[%s4961_s20 + $0x110] sm:$0xff] %v2934_v46  ;;  %v2338_v47 = vpop.f32.mrb[33].mxu1 }
 0x3b5   : > { %2497 = vst [vmem:[%s4961_s20 + $0x100] sm:$0xff] %v2338_v47  ;;  %v2935_v55 = vpop.f32.mrb[34].mxu1 }
 0x3b6   : > { %2500 = vst [vmem:[%s4961_s20 + $0x118] sm:$0xff] %v2935_v55  ;;  %v2341_v31 = vpop.f32.mrb[35].mxu1 }
 0x3b7   : > { %2498 = vst [vmem:[%s4961_s20 + $0x108] sm:$0xff] %v2341_v31 }
 0x3bb   : > { %v2938_v25 = vpop.f32.mrb[36].mxu1 }
 0x3bc   : > { %2503 = vst [vmem:[%s4961_s20 + $0x130] sm:$0xff] %v2938_v25  ;;  %v2354_v42 = vpop.f32.mrb[37].mxu1 }
 0x3bd   : > { %2501 = vst [vmem:[%s4961_s20 + $0x120] sm:$0xff] %v2354_v42  ;;  %v2939_v9 = vpop.f32.mrb[38].mxu1 }
 0x3be   : > { %2504 = vst [vmem:[%s4961_s20 + $0x138] sm:$0xff] %v2939_v9  ;;  %v2357_v8 = vpop.f32.mrb[39].mxu1 }
 0x3bf   : > { %2502 = vst [vmem:[%s4961_s20 + $0x128] sm:$0xff] %v2357_v8 }
 0x3c3   : > { %v2942_v7 = vpop.f32.mrb[40].mxu1 }
 0x3c4   : > { %2507 = vst [vmem:[%s4961_s20 + $0x150] sm:$0xff] %v2942_v7  ;;  %v2370_v50 = vpop.f32.mrb[41].mxu1 }
 0x3c5   : > { %2505 = vst [vmem:[%s4961_s20 + $0x140] sm:$0xff] %v2370_v50  ;;  %v2943_v52 = vpop.f32.mrb[42].mxu1 }
 0x3c6   : > { %2508 = vst [vmem:[%s4961_s20 + $0x158] sm:$0xff] %v2943_v52  ;;  %v2373_v15 = vpop.f32.mrb[43].mxu1 }
 0x3c7   : > { %2506 = vst [vmem:[%s4961_s20 + $0x148] sm:$0xff] %v2373_v15 }
 0x3cb   : > { %v2946_v30 = vpop.f32.mrb[44].mxu1 }
 0x3cc   : > { %2511 = vst [vmem:[%s4961_s20 + $0x170] sm:$0xff] %v2946_v30  ;;  %v2386_v29 = vpop.f32.mrb[45].mxu1 }
 0x3cd   : > { %2509 = vst [vmem:[%s4961_s20 + $0x160] sm:$0xff] %v2386_v29  ;;  %v2947_v3 = vpop.f32.mrb[46].mxu1 }
 0x3ce   : > { %2512 = vst [vmem:[%s4961_s20 + $0x178] sm:$0xff] %v2947_v3  ;;  %v2389_v58 = vpop.f32.mrb[47].mxu1 }
 0x3cf   : > { %2510 = vst [vmem:[%s4961_s20 + $0x168] sm:$0xff] %v2389_v58 }
 0x3d3   : > { %v2950_v45 = vpop.f32.mrb[48].mxu1 }
 0x3d4   : > { %2515 = vst [vmem:[%s4961_s20 + $0x190] sm:$0xff] %v2950_v45  ;;  %v2402_v61 = vpop.f32.mrb[49].mxu1 }
 0x3d5   : > { %2513 = vst [vmem:[%s4961_s20 + $0x180] sm:$0xff] %v2402_v61  ;;  %v2951_v10 = vpop.f32.mrb[50].mxu1 }
 0x3d6   : > { %2516 = vst [vmem:[%s4961_s20 + $0x198] sm:$0xff] %v2951_v10  ;;  %v2405_v39 = vpop.f32.mrb[51].mxu1 }
 0x3d7   : > { %2514 = vst [vmem:[%s4961_s20 + $0x188] sm:$0xff] %v2405_v39 }
 0x3db   : > { %v2954_v62 = vpop.f32.mrb[52].mxu1 }
 0x3dc   : > { %2519 = vst [vmem:[%s4961_s20 + $0x1b0] sm:$0xff] %v2954_v62  ;;  %v2418_v36 = vpop.f32.mrb[53].mxu1 }
 0x3dd   : > { %2517 = vst [vmem:[%s4961_s20 + $0x1a0] sm:$0xff] %v2418_v36  ;;  %v2955_v2 = vpop.f32.mrb[54].mxu1 }
 0x3de   : > { %2520 = vst [vmem:[%s4961_s20 + $0x1b8] sm:$0xff] %v2955_v2  ;;  %v2421_v26 = vpop.f32.mrb[55].mxu1 }
 0x3df   : > { %2518 = vst [vmem:[%s4961_s20 + $0x1a8] sm:$0xff] %v2421_v26 }
 0x3e3   : > { %v2958_v43 = vpop.f32.mrb[56].mxu1 }
 0x3e4   : > { %2523 = vst [vmem:[%s4961_s20 + $0x1d0] sm:$0xff] %v2958_v43  ;;  %v2434_v13 = vpop.f32.mrb[57].mxu1 }
 0x3e5   : > { %2521 = vst [vmem:[%s4961_s20 + $0x1c0] sm:$0xff] %v2434_v13  ;;  %v2959_v40 = vpop.f32.mrb[58].mxu1 }
 0x3e6   : > { %2524 = vst [vmem:[%s4961_s20 + $0x1d8] sm:$0xff] %v2959_v40  ;;  %v2437_v48 = vpop.f32.mrb[59].mxu1 }
 0x3e7   : > { %2522 = vst [vmem:[%s4961_s20 + $0x1c8] sm:$0xff] %v2437_v48 }
 0x3eb   : > { %v2962_v4 = vpop.f32.mrb[60].mxu1 }
 0x3ec   : > { %2527 = vst [vmem:[%s4961_s20 + $0x1f0] sm:$0xff] %v2962_v4  ;;  %v2450_v41 = vpop.f32.mrb[61].mxu1 }
 0x3ed   : > { %2525 = vst [vmem:[%s4961_s20 + $0x1e0] sm:$0xff] %v2450_v41  ;;  %v2963_v57 = vpop.f32.mrb[62].mxu1 }
 0x3ee   : > { %2528 = vst [vmem:[%s4961_s20 + $0x1f8] sm:$0xff] %v2963_v57  ;;  %v2453_v60 = vpop.f32.mrb[63].mxu1 }
 0x3ef   : > { %2526 = vst [vmem:[%s4961_s20 + $0x1e8] sm:$0xff] %v2453_v60 }
 0x3f0   : > { %3498 = shalt.err (!%p3495_p1)
}
 0x3f1   : > { %s3499_s17 = scalar_lea.hbm %s5029_s28, 8192  ;;  %s3503_s30 = scalar_lea.hbm %s5081_s3, 16384 }
 0x3f2   : > { %p3500_p13 = scmp.ne.s32.totalorder %s5029_s28, %s3499_s17  ;;  %p3504_p4 = scmp.lt.u32.totalorder %s5029_s28, %s5081_s3 }
 0x3f3   : > { %p3505_p5 = scmp.lt.u32.totalorder %s3503_s30, %s3499_s17  ;;  %p3507_p11 = scmp.lt.u32.totalorder %s3499_s17, %s5029_s28 }
 0x3f4   : > { %p3501_p6 = pnand %p3500_p13, %p5243_p0 }
 0x3f5   : > { %p3506_p8 = por %p3505_p5, %p3504_p4 }
 0x3f6   : > { %p3502_p10 = pneg %p3501_p6 }
 0x3f7   : > { %p3508_p2 = por %p3507_p11, %p3506_p8 }
 0x3f9   : > { %p3509_p3 = pnand %p3508_p2, %p3502_p10 }
 0x3fb   : > { %3512 = shalt.err (!%p3509_p3)
}
 0x3fc   : > { %s3563_s18 = smov 128   ;;  %s3564_s20 = smov 8  }
 0x3fd   : > { %2974 = dma.vmem_to_hbm [thread:$0]  (%p5243_p0), %s5031_s8, 8192, %s5029_s28, %s2530_s16, %s3563_s18, %s3563_s18, %s3564_s20  }
 0x3fe PF: > { %s2559_s7 = sand.u32 1, %s3543_s12   ;;  %p5244_p7 = scmp.ne.s32.totalorder %s5134_s19, 0 }
 0x3ff   : > { %p5245_p9 = scmp.ge.s32.totalorder %s3555_s15, 2  ;;  %s2560_s24 = scalar_lea.sflag [#allocation4], %s2559_s7 }
 0x401   : > { %p2988_p12 = pnand %p5245_p9, %p5244_p7 }
 0x403   : > { %3538 = dma.done.wait (!%p2988_p12), %s2560_s24, 8192  }
 0x404   : > { %3540 = vsyncadd (!%p2988_p12), %s2560_s24, 4294959104  ;;  %p17_p1 = scmp.ge.s32.totalorder %s3701_s23, 4   ;;  %s5246_s12 = smov %s3547_s13 }
 0x405   : > { %s5247_s13 = smov %s3551_s14  ;;  %s5248_s14 = smov %s3717_s9 }
 0x406   : > { %s5249_s15 = smov %s3701_s23  ;;  %19 = sbr.rel (!%p17_p1) target bundleno = 6 (0x6), region = 85 }
 0x40d   :  { %2565 = vsyncpa [#allocation3], 1 }
 0x40e   :  { %2567 = vsyncpa [#allocation3 + $0x1], 1 }
 0x40f   :  { %2568 = vsyncpa [#allocation6], 1 }
 0x410   :  { %2569 = vsyncpa [#allocation4], 1 }
 0x411   :  { %2571 = vsyncpa [#allocation4 + $0x1], 1 }

</bundles_post_ra>
